<compile_context>
chip_gen: v7x
topology: tpu7x:2x2x1
jax: 0.10.0
libtpu: 0.0.40
codegen_flags: <defaults>
</compile_context>

<pallas_src>
import math
import numpy as np
import jax
import jax.numpy as jnp
from jax.experimental import pallas as pl
from jax.experimental.pallas import tpu as pltpu

LN_EPS = 1e-5


# ----------------------------- in-kernel helpers ------------------------------
def _ln(x, g, b):
    mu = jnp.mean(x, axis=-1, keepdims=True)
    xc = x - mu
    var = jnp.mean(xc * xc, axis=-1, keepdims=True)
    return xc * jax.lax.rsqrt(var + LN_EPS) * g + b


def _erf(x):
    # Abramowitz & Stegun 7.1.26 rational approximation (|err| < 1.5e-7); uses only EUP exp.
    a1, a2, a3, a4, a5 = 0.254829592, -0.284496736, 1.421413741, -1.453152027, 1.061405429
    p = 0.3275911
    ax = jnp.abs(x)
    t = 1.0 / (1.0 + p * ax)
    poly = t * (a1 + t * (a2 + t * (a3 + t * (a4 + t * a5))))
    e = 1.0 - poly * jnp.exp(-ax * ax)
    return jnp.where(x >= 0, e, -e)


def _gelu(x):  # torch.nn.GELU() default == exact (erf-based) GELU
    return 0.5 * x * (1.0 + _erf(x * (1.0 / math.sqrt(2.0))))


# ------------------------------- fused kernel ---------------------------------
def block_kernel(x_ref, g1_ref, b1_ref, d2_ref, wr_ref, wi_ref, invr_ref, invi_ref,
                 g2_ref, b2_ref, w1_ref, bh_ref, w2_ref, bo_ref, gamma_ref, o_ref):
    dot = lambda a, b: jnp.dot(a, b, preferred_element_type=jnp.float32)
    x = x_ref[...]                                   # (H*W, C) tokens of one batch element
    # ---- LN1 ----
    z = _ln(x, g1_ref[...], b1_ref[...])
    # ---- GlobalFilter: rfft2 -> per-(freq, channel) complex weight -> irfft2 (all 'ortho') ----
    hwf = wr_ref.shape[0]                            # H * (W//2 + 1)
    spec = dot(d2_ref[...], z)                       # (2*hwf, C) = [Fr ; Fi] stacked
    fr = spec[:hwf, :]                               # sublane-aligned slices (hwf % 8 == 0 here)
    fi = spec[hwf:, :]
    wr = wr_ref[...]
    wi = wi_ref[...]
    gr = fr * wr - fi * wi
    gi = fr * wi + fi * wr
    y = dot(invr_ref[...], gr) + dot(invi_ref[...], gi)   # (H*W, C); INVI carries the -1 already
    # ---- LN2 + MLP + layer-scale residual (Dropout / DropPath with p=0 -> identity) ----
    z2 = _ln(y, g2_ref[...], b2_ref[...])
    h = _gelu(dot(z2, w1_ref[...]) + bh_ref[...])
    o = dot(h, w2_ref[...]) + bo_ref[...]
    o_ref[...] = x + gamma_ref[...] * o


# ----------------- host-side exact DFT operators (numpy, float64) --------------
def _spectral_operators(H, W):
    """Flattened-(H*W) operators realizing rfft2 / irfft2 (norm='ortho') as matmuls."""
    Wf = W // 2 + 1
    hh = np.arange(H)
    ww = np.arange(W)
    kw = np.arange(Wf)
    ang_h = 2.0 * np.pi * np.outer(hh, hh) / H            # (H, H), symmetric
    CH = np.cos(ang_h) / np.sqrt(H)
    SH = np.sin(ang_h) / np.sqrt(H)
    ang_w = 2.0 * np.pi * np.outer(kw, ww) / W             # (Wf, W)
    CW = np.cos(ang_w) / np.sqrt(W)
    SW = np.sin(ang_w) / np.sqrt(W)
    # forward rfft2: complex factor (CH - i SH) x (CW - i SW), stacked [real ; imag]
    D2R = np.kron(CH, CW) - np.kron(SH, SW)                # (H*Wf, H*W)
    D2I = -(np.kron(CH, SW) + np.kron(SH, CW))
    D2 = np.concatenate([D2R, D2I], axis=0)                # (2*H*Wf, H*W)
    # inverse irfft2: complex ifft along H (e^{+i}) then halfcomplex c2r along W (alpha fold)
    alpha = np.full((Wf,), 2.0)
    alpha[0] = 1.0
    if W % 2 == 0:
        alpha[-1] = 1.0                                    # Nyquist bin appears once
    RC = (alpha[:, None] * np.cos(ang_w)) / np.sqrt(W)     # (Wf, W)
    RS = (alpha[:, None] * np.sin(ang_w)) / np.sqrt(W)
    INVR = np.kron(CH, RC.T) - np.kron(SH, RS.T)           # (H*W, H*Wf)   applied to Gr
    INVI = np.kron(CH, RS.T) + np.kron(SH, RC.T)           # (H*W, H*Wf)   applied to Gi (negated)
    return (jnp.asarray(D2, jnp.float32),
            jnp.asarray(INVR, jnp.float32),
            jnp.asarray(-INVI, jnp.float32))


# ---------------------------------- wrapper ------------------------------------
def block_layer_scale_forward(x, params):
    """x: (B, H, W, C) float32.  Returns x + gamma * MLP(LN2(GlobalFilter(LN1(x))))."""
    B, Hs, Ws, C = x.shape
    HW = Hs * Ws
    Wf = Ws // 2 + 1
    HWf = Hs * Wf
    Hd = params["w1"].shape[1]
    x3 = x.reshape(B, HW, C)                               # free reshape (trailing-dim merge)

    fixed = lambda shape: pl.BlockSpec(shape, lambda b: (0,) * len(shape))   # grid-invariant
    out3 = pl.pallas_call(
        block_kernel,
        out_shape=jax.ShapeDtypeStruct((B, HW, C), jnp.float32),
        grid=(B,),
        in_specs=[
            pl.BlockSpec((None, HW, C), lambda b: (b, 0, 0)),   # x tokens (per batch element)
            fixed((1, C)), fixed((1, C)),                       # LN1 gamma / beta
            fixed((2 * HWf, HW)),                               # forward 2-D DFT operator
            fixed((HWf, C)), fixed((HWf, C)),                   # spectral weight real / imag
            fixed((HW, HWf)), fixed((HW, HWf)),                 # inverse DFT operators (Re / Im)
            fixed((1, C)), fixed((1, C)),                       # LN2 gamma / beta
            fixed((C, Hd)), fixed((1, Hd)),                     # MLP fc1 weight / bias
            fixed((Hd, C)), fixed((1, C)),                      # MLP fc2 weight / bias
            fixed((1, C)),                                      # layer-scale gamma
        ],
        out_specs=pl.BlockSpec((None, HW, C), lambda b: (b, 0, 0)),
        compiler_params=pltpu.CompilerParams(dimension_semantics=("parallel",)),
    )(x3,
      params["g1"].reshape(1, C), params["b1"].reshape(1, C),
      params["d2"], params["wr"], params["wi"],
      params["invr"], params["invi"],
      params["g2"].reshape(1, C), params["b2"].reshape(1, C),
      params["w1"], params["bh"].reshape(1, Hd),
      params["w2"], params["bo"].reshape(1, C),
      params["gamma"].reshape(1, C))
    return out3.reshape(B, Hs, Ws, C)


# ------------------------- deterministic parameter init ------------------------
def init_params(key, C, Hs, Ws, mlp_ratio=4.0, init_values=1e-5):
    Wf = Ws // 2 + 1
    Hd = int(C * mlp_ratio)
    k = jax.random.split(key, 5)
    cw_full = jax.random.normal(k[0], (Hs, Wf, C, 2), jnp.float32) * 0.02   # complex_weight
    d2, invr, invi = _spectral_operators(Hs, Ws)
    return dict(
        g1=jnp.ones((C,), jnp.float32), b1=jnp.zeros((C,), jnp.float32),
        g2=jnp.ones((C,), jnp.float32), b2=jnp.zeros((C,), jnp.float32),
        gamma=jnp.full((C,), init_values, jnp.float32),
        wr=cw_full[..., 0].reshape(Hs * Wf, C),             # (H*Wf, C)
        wi=cw_full[..., 1].reshape(Hs * Wf, C),
        d2=d2, invr=invr, invi=invi,
        w1=jax.random.normal(k[1], (C, Hd), jnp.float32) * (1.0 / math.sqrt(C)),
        bh=jax.random.normal(k[2], (Hd,), jnp.float32) * 0.01,
        w2=jax.random.normal(k[3], (Hd, C), jnp.float32) * (1.0 / math.sqrt(Hd)),
        bo=jax.random.normal(k[4], (C,), jnp.float32) * 0.01,
        cw_full=cw_full,
    )


# -------------------------------- pure-JAX ref ---------------------------------
def reference_forward(x, p):
    def ln(v, g, b):
        mu = jnp.mean(v, -1, keepdims=True)
        var = jnp.mean((v - mu) ** 2, -1, keepdims=True)
        return (v - mu) * jax.lax.rsqrt(var + LN_EPS) * g + b
    B, Hs, Ws, C = x.shape
    z = ln(x, p["g1"], p["b1"])
    zf = jnp.fft.rfft2(z, axes=(1, 2), norm="ortho")
    wc = p["cw_full"][..., 0] + 1j * p["cw_full"][..., 1]
    y = jnp.fft.irfft2(zf * wc[None], s=(Hs, Ws), axes=(1, 2), norm="ortho")
    z2 = ln(y, p["g2"], p["b2"])
    h = jax.nn.gelu(jnp.einsum("bhwc,cd->bhwd", z2, p["w1"], precision="highest") + p["bh"],
                    approximate=False)
    o = jnp.einsum("bhwd,dc->bhwc", h, p["w2"], precision="highest") + p["bo"]
    return x + p["gamma"] * o


# ------------------------------------ main -------------------------------------
if __name__ == "__main__":
    # GFNet BlockLayerScale with dim=32, h=8, w=W//2+1=5  ->  x is (B, 8, 8, 32)
    B, Hs, Ws, C = 2, 8, 8, 32
    key = jax.random.PRNGKey(0)
    kx, kp = jax.random.split(key)
    x = jax.random.normal(kx, (B, Hs, Ws, C), jnp.float32)
    params = init_params(kp, C, Hs, Ws)

    fwd = jax.jit(block_layer_scale_forward)
    out = jax.block_until_ready(fwd(x, params))
    ref = jax.block_until_ready(reference_forward(x, params))

    assert out.shape == x.shape and bool(jnp.isfinite(out).all())
    err = float(jnp.max(jnp.abs(out - ref)))
    assert err < 1e-6, f"mismatch vs pure-JAX reference: max|diff|={err}"
    print("KERNEL_OK")
</pallas_src>

<mosaic_0001>
module attributes {stable_mosaic.version = 11 : i64} {
  func.func @block_kernel(%arg0: i32, %arg1: memref<1x64x32xf32, #tpu.memory_space<vmem>>, %arg2: memref<1x32xf32, #tpu.memory_space<vmem>>, %arg3: memref<1x32xf32, #tpu.memory_space<vmem>>, %arg4: memref<80x64xf32, #tpu.memory_space<vmem>>, %arg5: memref<40x32xf32, #tpu.memory_space<vmem>>, %arg6: memref<40x32xf32, #tpu.memory_space<vmem>>, %arg7: memref<64x40xf32, #tpu.memory_space<vmem>>, %arg8: memref<64x40xf32, #tpu.memory_space<vmem>>, %arg9: memref<1x32xf32, #tpu.memory_space<vmem>>, %arg10: memref<1x32xf32, #tpu.memory_space<vmem>>, %arg11: memref<32x128xf32, #tpu.memory_space<vmem>>, %arg12: memref<1x128xf32, #tpu.memory_space<vmem>>, %arg13: memref<128x32xf32, #tpu.memory_space<vmem>>, %arg14: memref<1x32xf32, #tpu.memory_space<vmem>>, %arg15: memref<1x32xf32, #tpu.memory_space<vmem>>, %arg16: memref<1x64x32xf32, #tpu.memory_space<vmem>>) attributes {dimension_semantics = [#tpu.dimension_semantics<parallel>], iteration_bounds = array<i64: 2>, scalar_prefetch = 0 : i64, scratch_operands = 0 : i64, tpu.core_type = #tpu.core_type<tc>, window_params = [{transform_indices = @transform_0, window_bounds = array<i64: 1, 64, 32>}, {pipeline_mode = #tpu.pipeline_mode<synchronous>, transform_indices = @transform_1, window_bounds = array<i64: 1, 32>}, {pipeline_mode = #tpu.pipeline_mode<synchronous>, transform_indices = @transform_2, window_bounds = array<i64: 1, 32>}, {pipeline_mode = #tpu.pipeline_mode<synchronous>, transform_indices = @transform_3, window_bounds = array<i64: 80, 64>}, {pipeline_mode = #tpu.pipeline_mode<synchronous>, transform_indices = @transform_4, window_bounds = array<i64: 40, 32>}, {pipeline_mode = #tpu.pipeline_mode<synchronous>, transform_indices = @transform_5, window_bounds = array<i64: 40, 32>}, {pipeline_mode = #tpu.pipeline_mode<synchronous>, transform_indices = @transform_6, window_bounds = array<i64: 64, 40>}, {pipeline_mode = #tpu.pipeline_mode<synchronous>, transform_indices = @transform_7, window_bounds = array<i64: 64, 40>}, {pipeline_mode = #tpu.pipeline_mode<synchronous>, transform_indices = @transform_8, window_bounds = array<i64: 1, 32>}, {pipeline_mode = #tpu.pipeline_mode<synchronous>, transform_indices = @transform_9, window_bounds = array<i64: 1, 32>}, {pipeline_mode = #tpu.pipeline_mode<synchronous>, transform_indices = @transform_10, window_bounds = array<i64: 32, 128>}, {pipeline_mode = #tpu.pipeline_mode<synchronous>, transform_indices = @transform_11, window_bounds = array<i64: 1, 128>}, {pipeline_mode = #tpu.pipeline_mode<synchronous>, transform_indices = @transform_12, window_bounds = array<i64: 128, 32>}, {pipeline_mode = #tpu.pipeline_mode<synchronous>, transform_indices = @transform_13, window_bounds = array<i64: 1, 32>}, {pipeline_mode = #tpu.pipeline_mode<synchronous>, transform_indices = @transform_14, window_bounds = array<i64: 1, 32>}, {transform_indices = @transform_15, window_bounds = array<i64: 1, 64, 32>}]} {
    %c0 = arith.constant 0 : index
    %c0_0 = arith.constant 0 : index
    %c0_1 = arith.constant 0 : index
    %0 = vector.load %arg1[%c0, %c0_0, %c0_1] : memref<1x64x32xf32, #tpu.memory_space<vmem>>, vector<1x64x32xf32>
    %1 = vector.shape_cast %0 : vector<1x64x32xf32> to vector<64x32xf32>
    %c0_2 = arith.constant 0 : index
    %c0_3 = arith.constant 0 : index
    %2 = vector.load %arg2[%c0_2, %c0_3] : memref<1x32xf32, #tpu.memory_space<vmem>>, vector<1x32xf32>
    %c0_4 = arith.constant 0 : index
    %c0_5 = arith.constant 0 : index
    %3 = vector.load %arg3[%c0_4, %c0_5] : memref<1x32xf32, #tpu.memory_space<vmem>>, vector<1x32xf32>
    %cst = arith.constant dense<0.000000e+00> : vector<64xf32>
    %4 = vector.multi_reduction <add>, %1, %cst [1] : vector<64x32xf32> to vector<64xf32>
    %5 = vector.shape_cast %4 : vector<64xf32> to vector<64x1xf32>
    %cst_6 = arith.constant 3.200000e+01 : f32
    %6 = vector.broadcast %cst_6 : f32 to vector<64x1xf32>
    %7 = arith.divf %5, %6 : vector<64x1xf32>
    %8 = vector.broadcast %7 : vector<64x1xf32> to vector<64x32xf32>
    %9 = arith.subf %1, %8 : vector<64x32xf32>
    %10 = arith.mulf %9, %9 : vector<64x32xf32>
    %cst_7 = arith.constant dense<0.000000e+00> : vector<64xf32>
    %11 = vector.multi_reduction <add>, %10, %cst_7 [1] : vector<64x32xf32> to vector<64xf32>
    %12 = vector.shape_cast %11 : vector<64xf32> to vector<64x1xf32>
    %cst_8 = arith.constant 3.200000e+01 : f32
    %13 = vector.broadcast %cst_8 : f32 to vector<64x1xf32>
    %14 = arith.divf %12, %13 : vector<64x1xf32>
    %cst_9 = arith.constant 9.99999974E-6 : f32
    %15 = vector.broadcast %cst_9 : f32 to vector<64x1xf32>
    %16 = arith.addf %14, %15 : vector<64x1xf32>
    %17 = math.rsqrt %16 : vector<64x1xf32>
    %18 = vector.broadcast %17 : vector<64x1xf32> to vector<64x32xf32>
    %19 = arith.mulf %9, %18 : vector<64x32xf32>
    %20 = vector.broadcast %2 : vector<1x32xf32> to vector<64x32xf32>
    %21 = arith.mulf %19, %20 : vector<64x32xf32>
    %22 = vector.broadcast %3 : vector<1x32xf32> to vector<64x32xf32>
    %23 = arith.addf %21, %22 : vector<64x32xf32>
    %c0_10 = arith.constant 0 : index
    %c0_11 = arith.constant 0 : index
    %24 = vector.load %arg4[%c0_10, %c0_11] : memref<80x64xf32, #tpu.memory_space<vmem>>, vector<80x64xf32>
    %cst_12 = arith.constant dense<0.000000e+00> : vector<80x32xf32>
    %25 = tpu.matmul %24, %23, %cst_12 {dimension_numbers = #tpu.dot_dimension_numbers<[1], [0], [0], [1], [0, 0, 1, 1], [], []>} : vector<80x64xf32>, vector<64x32xf32>, vector<80x32xf32> -> vector<80x32xf32>
    %26 = vector.extract_strided_slice %25 {offsets = [0, 0], sizes = [40, 32], strides = [1, 1]} : vector<80x32xf32> to vector<40x32xf32>
    %27 = vector.extract_strided_slice %25 {offsets = [40, 0], sizes = [40, 32], strides = [1, 1]} : vector<80x32xf32> to vector<40x32xf32>
    %c0_13 = arith.constant 0 : index
    %c0_14 = arith.constant 0 : index
    %28 = vector.load %arg5[%c0_13, %c0_14] : memref<40x32xf32, #tpu.memory_space<vmem>>, vector<40x32xf32>
    %c0_15 = arith.constant 0 : index
    %c0_16 = arith.constant 0 : index
    %29 = vector.load %arg6[%c0_15, %c0_16] : memref<40x32xf32, #tpu.memory_space<vmem>>, vector<40x32xf32>
    %30 = arith.mulf %26, %28 : vector<40x32xf32>
    %31 = arith.mulf %27, %29 : vector<40x32xf32>
    %32 = arith.subf %30, %31 : vector<40x32xf32>
    %33 = arith.mulf %26, %29 : vector<40x32xf32>
    %34 = arith.mulf %27, %28 : vector<40x32xf32>
    %35 = arith.addf %33, %34 : vector<40x32xf32>
    %c0_17 = arith.constant 0 : index
    %c0_18 = arith.constant 0 : index
    %36 = vector.load %arg7[%c0_17, %c0_18] : memref<64x40xf32, #tpu.memory_space<vmem>>, vector<64x40xf32>
    %cst_19 = arith.constant dense<0.000000e+00> : vector<64x32xf32>
    %37 = tpu.matmul %36, %32, %cst_19 {dimension_numbers = #tpu.dot_dimension_numbers<[1], [0], [0], [1], [0, 0, 1, 1], [], []>} : vector<64x40xf32>, vector<40x32xf32>, vector<64x32xf32> -> vector<64x32xf32>
    %c0_20 = arith.constant 0 : index
    %c0_21 = arith.constant 0 : index
    %38 = vector.load %arg8[%c0_20, %c0_21] : memref<64x40xf32, #tpu.memory_space<vmem>>, vector<64x40xf32>
    %cst_22 = arith.constant dense<0.000000e+00> : vector<64x32xf32>
    %39 = tpu.matmul %38, %35, %cst_22 {dimension_numbers = #tpu.dot_dimension_numbers<[1], [0], [0], [1], [0, 0, 1, 1], [], []>} : vector<64x40xf32>, vector<40x32xf32>, vector<64x32xf32> -> vector<64x32xf32>
    %40 = arith.addf %37, %39 : vector<64x32xf32>
    %c0_23 = arith.constant 0 : index
    %c0_24 = arith.constant 0 : index
    %41 = vector.load %arg9[%c0_23, %c0_24] : memref<1x32xf32, #tpu.memory_space<vmem>>, vector<1x32xf32>
    %c0_25 = arith.constant 0 : index
    %c0_26 = arith.constant 0 : index
    %42 = vector.load %arg10[%c0_25, %c0_26] : memref<1x32xf32, #tpu.memory_space<vmem>>, vector<1x32xf32>
    %cst_27 = arith.constant dense<0.000000e+00> : vector<64xf32>
    %43 = vector.multi_reduction <add>, %40, %cst_27 [1] : vector<64x32xf32> to vector<64xf32>
    %44 = vector.shape_cast %43 : vector<64xf32> to vector<64x1xf32>
    %cst_28 = arith.constant 3.200000e+01 : f32
    %45 = vector.broadcast %cst_28 : f32 to vector<64x1xf32>
    %46 = arith.divf %44, %45 : vector<64x1xf32>
    %47 = vector.broadcast %46 : vector<64x1xf32> to vector<64x32xf32>
    %48 = arith.subf %40, %47 : vector<64x32xf32>
    %49 = arith.mulf %48, %48 : vector<64x32xf32>
    %cst_29 = arith.constant dense<0.000000e+00> : vector<64xf32>
    %50 = vector.multi_reduction <add>, %49, %cst_29 [1] : vector<64x32xf32> to vector<64xf32>
    %51 = vector.shape_cast %50 : vector<64xf32> to vector<64x1xf32>
    %cst_30 = arith.constant 3.200000e+01 : f32
    %52 = vector.broadcast %cst_30 : f32 to vector<64x1xf32>
    %53 = arith.divf %51, %52 : vector<64x1xf32>
    %cst_31 = arith.constant 9.99999974E-6 : f32
    %54 = vector.broadcast %cst_31 : f32 to vector<64x1xf32>
    %55 = arith.addf %53, %54 : vector<64x1xf32>
    %56 = math.rsqrt %55 : vector<64x1xf32>
    %57 = vector.broadcast %56 : vector<64x1xf32> to vector<64x32xf32>
    %58 = arith.mulf %48, %57 : vector<64x32xf32>
    %59 = vector.broadcast %41 : vector<1x32xf32> to vector<64x32xf32>
    %60 = arith.mulf %58, %59 : vector<64x32xf32>
    %61 = vector.broadcast %42 : vector<1x32xf32> to vector<64x32xf32>
    %62 = arith.addf %60, %61 : vector<64x32xf32>
    %c0_32 = arith.constant 0 : index
    %c0_33 = arith.constant 0 : index
    %63 = vector.load %arg11[%c0_32, %c0_33] : memref<32x128xf32, #tpu.memory_space<vmem>>, vector<32x128xf32>
    %cst_34 = arith.constant dense<0.000000e+00> : vector<64x128xf32>
    %64 = tpu.matmul %62, %63, %cst_34 {dimension_numbers = #tpu.dot_dimension_numbers<[1], [0], [0], [1], [0, 0, 1, 1], [], []>} : vector<64x32xf32>, vector<32x128xf32>, vector<64x128xf32> -> vector<64x128xf32>
    %c0_35 = arith.constant 0 : index
    %c0_36 = arith.constant 0 : index
    %65 = vector.load %arg12[%c0_35, %c0_36] : memref<1x128xf32, #tpu.memory_space<vmem>>, vector<1x128xf32>
    %66 = vector.broadcast %65 : vector<1x128xf32> to vector<64x128xf32>
    %67 = arith.addf %64, %66 : vector<64x128xf32>
    %cst_37 = arith.constant 5.000000e-01 : f32
    %68 = vector.broadcast %cst_37 : f32 to vector<64x128xf32>
    %69 = arith.mulf %68, %67 : vector<64x128xf32>
    %cst_38 = arith.constant 0.707106769 : f32
    %70 = vector.broadcast %cst_38 : f32 to vector<64x128xf32>
    %71 = arith.mulf %67, %70 : vector<64x128xf32>
    %72 = math.absf %71 : vector<64x128xf32>
    %cst_39 = arith.constant 0.327591091 : f32
    %73 = vector.broadcast %cst_39 : f32 to vector<64x128xf32>
    %74 = arith.mulf %73, %72 : vector<64x128xf32>
    %cst_40 = arith.constant 1.000000e+00 : f32
    %75 = vector.broadcast %cst_40 : f32 to vector<64x128xf32>
    %76 = arith.addf %75, %74 : vector<64x128xf32>
    %cst_41 = arith.constant 1.000000e+00 : f32
    %77 = vector.broadcast %cst_41 : f32 to vector<64x128xf32>
    %78 = arith.divf %77, %76 : vector<64x128xf32>
    %cst_42 = arith.constant 1.06140542 : f32
    %79 = vector.broadcast %cst_42 : f32 to vector<64x128xf32>
    %80 = arith.mulf %78, %79 : vector<64x128xf32>
    %cst_43 = arith.constant -1.45315206 : f32
    %81 = vector.broadcast %cst_43 : f32 to vector<64x128xf32>
    %82 = arith.addf %81, %80 : vector<64x128xf32>
    %83 = arith.mulf %78, %82 : vector<64x128xf32>
    %cst_44 = arith.constant 1.42141378 : f32
    %84 = vector.broadcast %cst_44 : f32 to vector<64x128xf32>
    %85 = arith.addf %84, %83 : vector<64x128xf32>
    %86 = arith.mulf %78, %85 : vector<64x128xf32>
    %cst_45 = arith.constant -0.284496725 : f32
    %87 = vector.broadcast %cst_45 : f32 to vector<64x128xf32>
    %88 = arith.addf %87, %86 : vector<64x128xf32>
    %89 = arith.mulf %78, %88 : vector<64x128xf32>
    %cst_46 = arith.constant 0.254829586 : f32
    %90 = vector.broadcast %cst_46 : f32 to vector<64x128xf32>
    %91 = arith.addf %90, %89 : vector<64x128xf32>
    %92 = arith.mulf %78, %91 : vector<64x128xf32>
    %cst_47 = arith.constant 0.000000e+00 : f32
    %93 = vector.broadcast %cst_47 : f32 to vector<64x128xf32>
    %94 = arith.subf %93, %72 : vector<64x128xf32>
    %95 = arith.mulf %94, %72 : vector<64x128xf32>
    %96 = math.exp %95 : vector<64x128xf32>
    %97 = arith.mulf %92, %96 : vector<64x128xf32>
    %cst_48 = arith.constant 1.000000e+00 : f32
    %98 = vector.broadcast %cst_48 : f32 to vector<64x128xf32>
    %99 = arith.subf %98, %97 : vector<64x128xf32>
    %cst_49 = arith.constant 0.000000e+00 : f32
    %100 = vector.broadcast %cst_49 : f32 to vector<64x128xf32>
    %101 = arith.cmpf oge, %71, %100 : vector<64x128xf32>
    %cst_50 = arith.constant 0.000000e+00 : f32
    %102 = vector.broadcast %cst_50 : f32 to vector<64x128xf32>
    %103 = arith.subf %102, %99 : vector<64x128xf32>
    %104 = arith.select %101, %99, %103 : vector<64x128xi1>, vector<64x128xf32>
    %cst_51 = arith.constant 1.000000e+00 : f32
    %105 = vector.broadcast %cst_51 : f32 to vector<64x128xf32>
    %106 = arith.addf %105, %104 : vector<64x128xf32>
    %107 = arith.mulf %69, %106 : vector<64x128xf32>
    %c0_52 = arith.constant 0 : index
    %c0_53 = arith.constant 0 : index
    %108 = vector.load %arg13[%c0_52, %c0_53] : memref<128x32xf32, #tpu.memory_space<vmem>>, vector<128x32xf32>
    %cst_54 = arith.constant dense<0.000000e+00> : vector<64x32xf32>
    %109 = tpu.matmul %107, %108, %cst_54 {dimension_numbers = #tpu.dot_dimension_numbers<[1], [0], [0], [1], [0, 0, 1, 1], [], []>} : vector<64x128xf32>, vector<128x32xf32>, vector<64x32xf32> -> vector<64x32xf32>
    %c0_55 = arith.constant 0 : index
    %c0_56 = arith.constant 0 : index
    %110 = vector.load %arg14[%c0_55, %c0_56] : memref<1x32xf32, #tpu.memory_space<vmem>>, vector<1x32xf32>
    %111 = vector.broadcast %110 : vector<1x32xf32> to vector<64x32xf32>
    %112 = arith.addf %109, %111 : vector<64x32xf32>
    %c0_57 = arith.constant 0 : index
    %c0_58 = arith.constant 0 : index
    %113 = vector.load %arg15[%c0_57, %c0_58] : memref<1x32xf32, #tpu.memory_space<vmem>>, vector<1x32xf32>
    %114 = vector.broadcast %113 : vector<1x32xf32> to vector<64x32xf32>
    %115 = arith.mulf %114, %112 : vector<64x32xf32>
    %116 = arith.addf %1, %115 : vector<64x32xf32>
    %c0_59 = arith.constant 0 : index
    %c0_60 = arith.constant 0 : index
    %c0_61 = arith.constant 0 : index
    %117 = vector.load %arg16[%c0_59, %c0_60, %c0_61] : memref<1x64x32xf32, #tpu.memory_space<vmem>>, vector<1x64x32xf32>
    %118 = vector.shape_cast %117 : vector<1x64x32xf32> to vector<64x32xf32>
    %119 = vector.shape_cast %116 : vector<64x32xf32> to vector<1x64x32xf32>
    tpu.vector_store %arg16[%c0_59, %c0_60, %c0_61], %119 {strides = array<i32>} : memref<1x64x32xf32, #tpu.memory_space<vmem>>, vector<1x64x32xf32>,
    return
  }
  func.func @transform_0(%arg0: i32) -> (i32, i32, i32) {
    %c0_i32 = arith.constant 0 : i32
    %c0_i32_0 = arith.constant 0 : i32
    %c0_i32_1 = arith.constant 0 : i32
    return %arg0, %c0_i32, %c0_i32_0 : i32, i32, i32
  }
  func.func @transform_1(%arg0: i32) -> (i32, i32) {
    %c0_i32 = arith.constant 0 : i32
    %c0_i32_0 = arith.constant 0 : i32
    %c0_i32_1 = arith.constant 0 : i32
    return %c0_i32, %c0_i32_0 : i32, i32
  }
  func.func @transform_2(%arg0: i32) -> (i32, i32) {
    %c0_i32 = arith.constant 0 : i32
    %c0_i32_0 = arith.constant 0 : i32
    %c0_i32_1 = arith.constant 0 : i32
    return %c0_i32, %c0_i32_0 : i32, i32
  }
  func.func @transform_3(%arg0: i32) -> (i32, i32) {
    %c0_i32 = arith.constant 0 : i32
    %c0_i32_0 = arith.constant 0 : i32
    %c0_i32_1 = arith.constant 0 : i32
    return %c0_i32, %c0_i32_0 : i32, i32
  }
  func.func @transform_4(%arg0: i32) -> (i32, i32) {
    %c0_i32 = arith.constant 0 : i32
    %c0_i32_0 = arith.constant 0 : i32
    %c0_i32_1 = arith.constant 0 : i32
    return %c0_i32, %c0_i32_0 : i32, i32
  }
  func.func @transform_5(%arg0: i32) -> (i32, i32) {
    %c0_i32 = arith.constant 0 : i32
    %c0_i32_0 = arith.constant 0 : i32
    %c0_i32_1 = arith.constant 0 : i32
    return %c0_i32, %c0_i32_0 : i32, i32
  }
  func.func @transform_6(%arg0: i32) -> (i32, i32) {
    %c0_i32 = arith.constant 0 : i32
    %c0_i32_0 = arith.constant 0 : i32
    %c0_i32_1 = arith.constant 0 : i32
    return %c0_i32, %c0_i32_0 : i32, i32
  }
  func.func @transform_7(%arg0: i32) -> (i32, i32) {
    %c0_i32 = arith.constant 0 : i32
    %c0_i32_0 = arith.constant 0 : i32
    %c0_i32_1 = arith.constant 0 : i32
    return %c0_i32, %c0_i32_0 : i32, i32
  }
  func.func @transform_8(%arg0: i32) -> (i32, i32) {
    %c0_i32 = arith.constant 0 : i32
    %c0_i32_0 = arith.constant 0 : i32
    %c0_i32_1 = arith.constant 0 : i32
    return %c0_i32, %c0_i32_0 : i32, i32
  }
  func.func @transform_9(%arg0: i32) -> (i32, i32) {
    %c0_i32 = arith.constant 0 : i32
    %c0_i32_0 = arith.constant 0 : i32
    %c0_i32_1 = arith.constant 0 : i32
    return %c0_i32, %c0_i32_0 : i32, i32
  }
  func.func @transform_10(%arg0: i32) -> (i32, i32) {
    %c0_i32 = arith.constant 0 : i32
    %c0_i32_0 = arith.constant 0 : i32
    %c0_i32_1 = arith.constant 0 : i32
    return %c0_i32, %c0_i32_0 : i32, i32
  }
  func.func @transform_11(%arg0: i32) -> (i32, i32) {
    %c0_i32 = arith.constant 0 : i32
    %c0_i32_0 = arith.constant 0 : i32
    %c0_i32_1 = arith.constant 0 : i32
    return %c0_i32, %c0_i32_0 : i32, i32
  }
  func.func @transform_12(%arg0: i32) -> (i32, i32) {
    %c0_i32 = arith.constant 0 : i32
    %c0_i32_0 = arith.constant 0 : i32
    %c0_i32_1 = arith.constant 0 : i32
    return %c0_i32, %c0_i32_0 : i32, i32
  }
  func.func @transform_13(%arg0: i32) -> (i32, i32) {
    %c0_i32 = arith.constant 0 : i32
    %c0_i32_0 = arith.constant 0 : i32
    %c0_i32_1 = arith.constant 0 : i32
    return %c0_i32, %c0_i32_0 : i32, i32
  }
  func.func @transform_14(%arg0: i32) -> (i32, i32) {
    %c0_i32 = arith.constant 0 : i32
    %c0_i32_0 = arith.constant 0 : i32
    %c0_i32_1 = arith.constant 0 : i32
    return %c0_i32, %c0_i32_0 : i32, i32
  }
  func.func @transform_15(%arg0: i32) -> (i32, i32, i32) {
    %c0_i32 = arith.constant 0 : i32
    %c0_i32_0 = arith.constant 0 : i32
    %c0_i32_1 = arith.constant 0 : i32
    return %arg0, %c0_i32, %c0_i32_0 : i32, i32, i32
  }
}

</mosaic_0001>

<bundles_post_ra>
// kernel: block_layer_scale_forward.1
= control target key start
LH: loop header
LB: loop body
LE: loop exit
PB: predicated region body
PF: predicated region fallthrough
CT: control target
= control target key end

     0   :  { %s3060_s0 = inlined_call_operand.vmem [shape: f32[2,64,32], index: 0, kind: input, shape index: {}]   ;;  %s3061_s1 = inlined_call_operand.vmem [shape: f32[1,32], index: 1, kind: input, shape index: {}]   ;;  %s3062_s2 = inlined_call_operand.vmem [shape: f32[1,32], index: 2, kind: input, shape index: {}]   ;;  %s3063_s3 = inlined_call_operand.vmem [shape: f32[80,64], index: 3, kind: input, shape index: {}]   ;;  %s3064_s4 = inlined_call_operand.vmem [shape: f32[40,32], index: 4, kind: input, shape index: {}]   ;;  %s3065_s5 = inlined_call_operand.vmem [shape: f32[40,32], index: 5, kind: input, shape index: {}]   ;;  %s3066_s6 = inlined_call_operand.vmem [shape: f32[64,40], index: 6, kind: input, shape index: {}]   ;;  %s3067_s7 = inlined_call_operand.vmem [shape: f32[64,40], index: 7, kind: input, shape index: {}]   ;;  %s3068_s8 = inlined_call_operand.vmem [shape: f32[1,32], index: 8, kind: input, shape index: {}]   ;;  %s3069_s9 = inlined_call_operand.vmem [shape: f32[1,32], index: 9, kind: input, shape index: {}]   ;;  %s3070_s10 = inlined_call_operand.vmem [shape: f32[32,128], index: 10, kind: input, shape index: {}]   ;;  %s3071_s11 = inlined_call_operand.vmem [shape: f32[1,128], index: 11, kind: input, shape index: {}]   ;;  %s3072_s12 = inlined_call_operand.vmem [shape: f32[128,32], index: 12, kind: input, shape index: {}]   ;;  %s3073_s13 = inlined_call_operand.vmem [shape: f32[1,32], index: 13, kind: input, shape index: {}]   ;;  %s3074_s14 = inlined_call_operand.vmem [shape: f32[1,32], index: 14, kind: input, shape index: {}]   ;;  %s3075_s15 = inlined_call_operand.hbm [shape: f32[2,64,32], index: 15, kind: output, shape index: {}]  }
   0x1   :  { %3076 = sst [smem:[#allocation6_spill]] %s3060_s0 }
   0x2   :  { %3077 = sst [smem:[#allocation7_spill]] %s3061_s1 }
   0x3   :  { %3078 = sst [smem:[#allocation8_spill]] %s3062_s2 }
   0x4   :  { %3079 = sst [smem:[#allocation9_spill]] %s3063_s3 }
   0x5   :  { %20 = vsyncpa [#allocation3], 0 }
   0x6   :  { %22 = vsyncpa [#allocation3 + $0x1], 0  ;;  %s2447_s18 = smov 0   ;;  %s2449_s19 = smov 0  }
   0x7   :  { %s2451_s20 = smov 0   ;;  %s2453_s21 = smov 0  }
   0x8 LB: > { %s2468_s22 = sadd.s32 4294967295, %s2362_s21   ;;  %s1833_s23 = sadd.s32 4294967294, %s2362_s21   ;;  %s2362_s21 = sphi %s2453_s21, %s3091_s21   ;;  %s2358_s20 = sphi %s2451_s20, %s3090_s20   ;;  %s2354_s19 = sphi %s2449_s19, %s3089_s19   ;;  %s2350_s18 = sphi %s2447_s18, %s3088_s18  }
   0x9   : > { %s2472_s24 = sadd.s32 1, %s2362_s21   ;;  %s355_s25 = sadd.s32 1, %s2358_s20 }
   0xa   : > { %s352_s26 = ssub.s32 %s2362_s21, %s2472_s24  ;;  %p365_p0 = scmp.ne.s32.totalorder %s2358_s20, %s2354_s19 }
   0xb   : > { %p353_p1 = scmp.eq.s32.totalorder %s352_s26, 0  ;;  %p366_p2 = scmp.eq.s32.totalorder %s2468_s22, 1 }
   0xc   : > { %p371_p3 = scmp.ne.s32.totalorder %s2354_s19, %s2350_s18  ;;  %p372_p4 = scmp.eq.s32.totalorder %s1833_s23, 1 }
   0xd   : > { %s2483_s27 = scalar_select %p353_p1, %s2358_s20, %s355_s25  }
   0xe   : > { %p2485_p5 = por %p366_p2, %p365_p0  ;;  %p2489_p6 = por %p372_p4, %p371_p3 }
   0xf   : > { %3080 = sst [smem:[#allocation5_spill]] %s2483_s27  ;;  %p1836_p7 = scmp.ge.s32.totalorder %s2362_s21, 1 }
  0x10   : > { %p440_p8 = scmp.lt.s32.totalorder %s2362_s21, 3 }
  0x12   : > { %p441_p9 = pnand %p1836_p7, %p440_p8 }
  0x13   : > { %p488_p10 = scmp.lt.s32.totalorder (!%p441_p9), %s2468_s22, 1  ;;  %vm503_vm0 = vcmask (!%p441_p9), 261120   ;;  %s3083_s0 = sld [smem:[#allocation6_spill]] (!%p441_p9)  ;;  %vm647_vm1 = vcmask (!%p441_p9), 523264   ;;  %vm849_vm2 = vcmask (!%p441_p9), 326656  }
  0x14   : > { %444 = sbr.rel (%p441_p9) target bundleno = 1652 (0x674), region = 80  ;;  %s3084_s3 = sld [smem:[#allocation9_spill]] (!%p441_p9) }
  0x15   : > { %s3085_s1 = sld [smem:[#allocation7_spill]] (!%p441_p9)  ;;  %s3086_s2 = sld [smem:[#allocation8_spill]] (!%p441_p9) }
  0x16   : > { %s485_s17 = sand.u32 (!%p441_p9), 1, %s2354_s19   ;;  %s1887_s27 = sshll.u32 (!%p441_p9), %s2468_s22, 10 }
  0x1a   : > { %v637_v56 = vld [vmem:[%s3084_s3] sm:$0xff] (!%p441_p9) }
  0x1b   : > { %s489_s30 = scalar_select %p488_p10, %s2468_s22, 1  ;;  %1984 = vmatprep.mubr.msk.f32.mxu0 %vm647_vm1, %v637_v56 }
  0x1c   : > { %s3019_s22 = scalar_lea.sflag [#allocation3], %s485_s17 }
  0x1d   : > { %s1886_s16 = sshll.u32 %s489_s30, 6 }
  0x1e   : > { %s2500_s25 = scalar_lea.vmem %s3083_s0, %s1886_s16  ;;  %s3008_s0 = scalar_lea.hbm %s3075_s15, %s1887_s27 }
  0x1f   : > { %v493_v0 = vld [vmem:[%s2500_s25] sm:$0xff]  ;;  %v495_v1 = vld [vmem:[%s2500_s25 + $0x10] sm:$0xff]  ;;  %v494_v2 = vld [vmem:[%s2500_s25 + $0x8] sm:$0xff] }
  0x20   : > { %v504_v3 = vsel %vm503_vm0, %v493_v0, 0.0  ;;  %v510_v4 = vsel %vm503_vm0, %v495_v1, 0.0  ;;  %v496_v5 = vld [vmem:[%s2500_s25 + $0x18] sm:$0xff]  ;;  %v507_v6 = vsel %vm503_vm0, %v494_v2, 0.0  ;;  %v497_v8 = vld [vmem:[%s2500_s25 + $0x20] sm:$0xff]  ;;  %v498_v9 = vld [vmem:[%s2500_s25 + $0x28] sm:$0xff] }
  0x21   : > { %505 = vadd.xlane.f32.xlu0 %v504_v3  ;;  %511 = vadd.xlane.f32.xlu1 %v510_v4  ;;  %v513_v7 = vsel %vm503_vm0, %v496_v5, 0.0  ;;  %v516_v10 = vsel %vm503_vm0, %v497_v8, 0.0  ;;  %v519_v11 = vsel %vm503_vm0, %v498_v9, 0.0  ;;  %v499_v12 = vld [vmem:[%s2500_s25 + $0x30] sm:$0xff]  ;;  %v500_v13 = vld [vmem:[%s2500_s25 + $0x38] sm:$0xff] }
  0x22   : > { %v522_v14 = vsel %vm503_vm0, %v499_v12, 0.0  ;;  %v525_v15 = vsel %vm503_vm0, %v500_v13, 0.0 }
  0x25   : > { %508 = vadd.xlane.f32.xlu0 %v507_v6  ;;  %514 = vadd.xlane.f32.xlu1 %v513_v7 }
  0x29   : > { %517 = vadd.xlane.f32.xlu0 %v516_v10  ;;  %520 = vadd.xlane.f32.xlu1 %v519_v11 }
  0x2d   : > { %523 = vadd.xlane.f32.xlu0 %v522_v14  ;;  %526 = vadd.xlane.f32.xlu1 %v525_v15 }
  0xae   : > { %v506_v16 = vpop.xlane.xlu0 %505  ;;  %v512_v17 = vpop.xlane.xlu1 %511 }
  0xaf   : > { %v529_v18 = vmul.f32 0.03125, %v506_v16  ;;  %v531_v19 = vmul.f32 0.03125, %v512_v17 }
  0xb1   : > { %v2518_v20 = vsub.f32 %v493_v0, %v529_v18  ;;  %v2520_v21 = vsub.f32 %v495_v1, %v531_v19  ;;  %v1840_v18 = vld [vmem:[%s3085_s1] ss:$0 sm:$0xff]  ;;  %s2364_s1 = smov [#allocation2]  }
  0xb2   : > { %v509_v22 = vpop.xlane.xlu0 %508  ;;  %v515_v23 = vpop.xlane.xlu1 %514 }
  0xb3   : > { %v530_v24 = vmul.f32 0.03125, %v509_v22  ;;  %v532_v25 = vmul.f32 0.03125, %v515_v23  ;;  %v545_v26 = vmul.f32 %v2518_v20, %v2518_v20  ;;  %v547_v27 = vmul.f32 %v2520_v21, %v2520_v21 }
  0xb5   : > { %v2526_v28 = vsub.f32 %v494_v2, %v530_v24  ;;  %v2528_v29 = vsub.f32 %v496_v5, %v532_v25  ;;  %v553_v30 = vsel %vm503_vm0, %v545_v26, 0.0  ;;  %v559_v33 = vsel %vm503_vm0, %v547_v27, 0.0  ;;  %v1841_v26 = vld [vmem:[%s3086_s2] ss:$0 sm:$0xff]  ;;  %s1837_s2 = sshll.u32 %s485_s17, 6 }
  0xb6   : > { %554 = vadd.xlane.f32.xlu0 %v553_v30  ;;  %v518_v31 = vpop.xlane.xlu0 %517  ;;  %v521_v32 = vpop.xlane.xlu1 %520 }
  0xb7   : > { %v533_v34 = vmul.f32 0.03125, %v518_v31  ;;  %v534_v35 = vmul.f32 0.03125, %v521_v32  ;;  %v546_v36 = vmul.f32 %v2526_v28, %v2526_v28  ;;  %v548_v37 = vmul.f32 %v2528_v29, %v2528_v29 }
  0xb9   : > { %v2536_v38 = vsub.f32 %v497_v8, %v533_v34  ;;  %v2538_v39 = vsub.f32 %v498_v9, %v534_v35  ;;  %v556_v40 = vsel %vm503_vm0, %v546_v36, 0.0  ;;  %v562_v43 = vsel %vm503_vm0, %v548_v37, 0.0 }
  0xba   : > { %560 = vadd.xlane.f32.xlu0 %v559_v33  ;;  %557 = vadd.xlane.f32.xlu1 %v556_v40  ;;  %v524_v41 = vpop.xlane.xlu0 %523  ;;  %v527_v42 = vpop.xlane.xlu1 %526 }
  0xbb   : > { %v535_v44 = vmul.f32 0.03125, %v524_v41  ;;  %v536_v45 = vmul.f32 0.03125, %v527_v42  ;;  %v549_v46 = vmul.f32 %v2536_v38, %v2536_v38  ;;  %v550_v47 = vmul.f32 %v2538_v39, %v2538_v39 }
  0xbd   : > { %v2546_v48 = vsub.f32 %v499_v12, %v535_v44  ;;  %v2548_v49 = vsub.f32 %v500_v13, %v536_v45  ;;  %v565_v50 = vsel %vm503_vm0, %v549_v46, 0.0  ;;  %v568_v51 = vsel %vm503_vm0, %v550_v47, 0.0 }
  0xbe   : > { %563 = vadd.xlane.f32.xlu1 %v562_v43  ;;  %566 = vadd.xlane.f32.xlu0 %v565_v50 }
  0xbf   : > { %v551_v52 = vmul.f32 %v2546_v48, %v2546_v48  ;;  %v552_v53 = vmul.f32 %v2548_v49, %v2548_v49 }
  0xc1   : > { %v571_v54 = vsel %vm503_vm0, %v551_v52, 0.0  ;;  %v574_v55 = vsel %vm503_vm0, %v552_v53, 0.0 }
  0xc2   : > { %569 = vadd.xlane.f32.xlu1 %v568_v51  ;;  %572 = vadd.xlane.f32.xlu0 %v571_v54 }
  0xc6   : > { %575 = vadd.xlane.f32.xlu1 %v574_v55 }
 0x143   : > { %v555_v57 = vpop.xlane.xlu0 %554 }
 0x144   : > { %v577_v58 = vmul.f32 0.03125, %v555_v57  ;;  %v639_v57 = vld [vmem:[%s3084_s3 + $0x10] sm:$0xff] }
 0x146   : > { %v585_v59 = vadd.f32 1e-05, %v577_v58  ;;  %v641_v58 = vld [vmem:[%s3084_s3 + $0x20] sm:$0xff] }
 0x147   : > { %v558_v60 = vpop.xlane.xlu1 %557  ;;  %v561_v61 = vpop.xlane.xlu0 %560 }
 0x148   : > { %2228 = vrsqrt.f32 %v585_v59  ;;  %v578_v62 = vmul.f32 0.03125, %v558_v60  ;;  %v579_v63 = vmul.f32 0.03125, %v561_v61  ;;  %v642_v59 = vld [vmem:[%s3084_s3 + $0x28] sm:$0xff]  ;;  %v643_v60 = vld [vmem:[%s3084_s3 + $0x30] sm:$0xff]  ;;  %v644_v61 = vld [vmem:[%s3084_s3 + $0x38] sm:$0xff] }
 0x14a   : > { %v586_v0 = vadd.f32 1e-05, %v578_v62  ;;  %v587_v1 = vadd.f32 1e-05, %v579_v63  ;;  %v645_v62 = vld [vmem:[%s3084_s3 + $0x40] sm:$0xff]  ;;  %v646_v63 = vld [vmem:[%s3084_s3 + $0x48] sm:$0xff] }
 0x14b   : > { %v564_v2 = vpop.xlane.xlu1 %563  ;;  %v567_v3 = vpop.xlane.xlu0 %566 }
 0x14c   : > { %2230 = vrsqrt.f32 %v586_v0  ;;  %v580_v4 = vmul.f32 0.03125, %v564_v2  ;;  %v581_v5 = vmul.f32 0.03125, %v567_v3  ;;  %v841_v0 = vld [vmem:[%s3067_s7] sm:$0xff] }
 0x14d   : > { %2232 = vrsqrt.f32 %v587_v1  ;;  %v833_v1 = vld [vmem:[%s3066_s6] sm:$0xff] }
 0x14e   : > { %v588_v6 = vadd.f32 1e-05, %v580_v4  ;;  %v589_v7 = vadd.f32 1e-05, %v581_v5  ;;  %2031 = vmatprep.mubr.msk.f32.mxu1 %vm849_vm2, %v833_v1  ;;  %v838_v1 = vld [vmem:[%s3066_s6 + $0x28] sm:$0xff] }
 0x14f   : > { %v570_v8 = vpop.xlane.xlu1 %569  ;;  %v573_v9 = vpop.xlane.xlu0 %572 }
 0x150   : > { %2234 = vrsqrt.f32 %v588_v6  ;;  %v582_v10 = vmul.f32 0.03125, %v570_v8  ;;  %v583_v11 = vmul.f32 0.03125, %v573_v9  ;;  %v793_v6 = vld [vmem:[%s3064_s4] sm:$0xff] }
 0x151   : > { %2236 = vrsqrt.f32 %v589_v7  ;;  %v798_v7 = vld [vmem:[%s3065_s5] sm:$0xff] }
 0x152   : > { %v2229_v12 = vpop.eup %2228  ;;  %v590_v13 = vadd.f32 1e-05, %v582_v10  ;;  %v591_v14 = vadd.f32 1e-05, %v583_v11 }
 0x153   : > { %v576_v15 = vpop.xlane.xlu1 %575  ;;  %v601_v16 = vmul.f32 %v2229_v12, %v2518_v20 }
 0x154   : > { %2238 = vrsqrt.f32 %v590_v13  ;;  %v584_v17 = vmul.f32 0.03125, %v576_v15  ;;  %v800_v15 = vld [vmem:[%s3065_s5 + $0x10] sm:$0xff] }
 0x155   : > { %2240 = vrsqrt.f32 %v591_v14  ;;  %v615_v25 = vmul.f32 %v1840_v18, %v601_v16  ;;  %v795_v14 = vld [vmem:[%s3064_s4 + $0x10] sm:$0xff]  ;;  %v794_v16 = vld [vmem:[%s3064_s4 + $0x8] sm:$0xff] }
 0x156   : > { %v2231_v19 = vpop.eup %2230  ;;  %v592_v22 = vadd.f32 1e-05, %v584_v17  ;;  %v799_v17 = vld [vmem:[%s3065_s5 + $0x8] sm:$0xff] }
 0x157   : > { %v2233_v23 = vpop.eup %2232  ;;  %v602_v24 = vmul.f32 %v2231_v19, %v2526_v28  ;;  %v629_v32 = vadd.f32 %v1841_v26, %v615_v25 }
 0x158   : > { %2242 = vrsqrt.f32 %v592_v22  ;;  %v603_v20 = vmul.f32 %v2233_v23, %v2520_v21  ;;  %v796_v23 = vld [vmem:[%s3064_s4 + $0x18] sm:$0xff] }
 0x159   : > { %v616_v27 = vmul.f32 %v1840_v18, %v602_v24  ;;  %v801_v24 = vld [vmem:[%s3065_s5 + $0x18] sm:$0xff] }
 0x15a   : > { %v2235_v30 = vpop.eup %2234  ;;  %v617_v35 = vmul.f32 %v1840_v18, %v603_v20 }
 0x15b   : > { %v2237_v31 = vpop.eup %2236  ;;  %v630_v33 = vadd.f32 %v1841_v26, %v616_v27  ;;  %v604_v34 = vmul.f32 %v2235_v30, %v2528_v29 }
 0x15c   : > { %v605_v36 = vmul.f32 %v2237_v31, %v2536_v38  ;;  %v631_v42 = vadd.f32 %v1841_v26, %v617_v35 }
 0x15d   : > { %v2107_v37 = vpack.c.bf16 %v630_v33, %v629_v32  ;;  %v618_v28 = vmul.f32 %v1840_v18, %v604_v34  ;;  %v797_v33 = vld [vmem:[%s3064_s4 + $0x20] sm:$0xff] }
 0x15e   : > { %v2239_v40 = vpop.eup %2238  ;;  %v619_v21 = vmul.f32 %v1840_v18, %v605_v36  ;;  %v802_v34 = vld [vmem:[%s3065_s5 + $0x20] sm:$0xff] }
 0x15f   : > { %v2241_v41 = vpop.eup %2240  ;;  %2108 = vmatprep.subr.bf16.mxu0 %v2107_v37  ;;  %v632_v43 = vadd.f32 %v1841_v26, %v618_v28  ;;  %v606_v44 = vmul.f32 %v2239_v40, %v2538_v39 }
 0x160   : > { %2110 = vmatpush3.bf16.msra.mxu0 %v2107_v37  ;;  %v607_v45 = vmul.f32 %v2241_v41, %v2546_v48  ;;  %v633_v29 = vadd.f32 %v1841_v26, %v619_v21  ;;  %v638_v48 = vld [vmem:[%s3084_s3 + $0x8] sm:$0xff] }
 0x161   : > { %v2111_v46 = vpack.c.bf16 %v632_v43, %v631_v42  ;;  %v620_v47 = vmul.f32 %v1840_v18, %v606_v44 }
 0x162   : > { %v2243_v50 = vpop.eup %2242  ;;  %v621_v52 = vmul.f32 %v1840_v18, %v607_v45 }
 0x163   : > { %2112 = vmatprep.subr.bf16.mxu0 %v2111_v46  ;;  %v634_v51 = vadd.f32 %v1841_v26, %v620_v47  ;;  %v608_v38 = vmul.f32 %v2243_v50, %v2548_v49  ;;  %v640_v49 = vld [vmem:[%s3084_s3 + $0x18] sm:$0xff]  ;;  %s2984_s3 = scalar_lea.vmem [#allocation2], %s1837_s2  ;;  %s2304_s2 = sshll.u32 %s2364_s1, 4  ;;  %s2305_s2 = int_to_ptr.vmem [resolvable:$false] %s2304_s2 }
 0x164   : > { %2114 = vmatpush3.bf16.msra.mxu0 %v2111_v46  ;;  %v635_v55 = vadd.f32 %v1841_v26, %v621_v52  ;;  %s1771_s30 = sshll.u32 %s2984_s3, 4  ;;  %s2306_s27 = scalar_lea.vmem %s2305_s2, 2048  ;;  %s3010_s30 = int_to_ptr.vmem [resolvable:$true] %s1771_s30 }
 0x165   : > { %v2115_v53 = vpack.c.bf16 %v634_v51, %v633_v29  ;;  %v622_v54 = vmul.f32 %v1840_v18, %v608_v38  ;;  %s2300_s26 = scalar_lea.vmem %s3010_s30, 1024  ;;  %p2307_p0 = scmp.lt.s32.totalorder %s3010_s30, %s2305_s2 }
 0x166   : > { %p2301_p11 = scmp.ne.s32.totalorder %s3010_s30, %s2300_s26  ;;  %p2308_p1 = scmp.lt.s32.totalorder %s2306_s27, %s2300_s26 }
 0x167   : > { %2116 = vmatprep.subr.bf16.mxu0 %v2115_v53  ;;  %v636_v56 = vadd.f32 %v1841_v26, %v622_v54 }
 0x168   : > { %2118 = vmatpush3.bf16.msra.mxu0 %v2115_v53  ;;  %p2302_p12 = pnand %p2301_p11, %p2485_p5  ;;  %p2309_p2 = por %p2308_p1, %p2307_p0 }
 0x169   : > { %v2119_v39 = vpack.c.bf16 %v636_v56, %v635_v55 }
 0x16a   : > { %p2303_p13 = pneg %p2302_p12 }
 0x16b   : > { %2120 = vmatprep.subr.bf16.mxu0 %v2119_v39 }
 0x16c   : > { %2122 = vmatpush3.bf16.msra.mxu0 %v2119_v39  ;;  %p2310_p3 = pnand %p2309_p2, %p2303_p13 }
 0x16f   : > { %1985 = vmatmul.mubr.msk.f32.vlgmr.msra.gmra.mrb[0].mxu0 %vm647_vm1, %v638_v48 }
 0x170   : > { %1987 = vmatprep.mubr.msk.f32.mxu0 %vm647_vm1, %v639_v57  ;;  %v842_v57 = vld [vmem:[%s3067_s7 + $0x8] sm:$0xff] }
 0x173   : > { %1988 = vmatmul.mubr.msk.f32.gmra.mrb[2].mxu0 %vm647_vm1, %v640_v49  ;;  %v834_v49 = vld [vmem:[%s3066_s6 + $0x8] sm:$0xff] }
 0x174   : > { %1990 = vmatprep.mubr.msk.f32.mxu0 %vm647_vm1, %v641_v58  ;;  %v843_v58 = vld [vmem:[%s3067_s7 + $0x10] sm:$0xff] }
 0x177   : > { %1991 = vmatmul.mubr.msk.f32.gmra.mrb[4].mxu0 %vm647_vm1, %v642_v59  ;;  %v835_v59 = vld [vmem:[%s3066_s6 + $0x10] sm:$0xff] }
 0x178   : > { %1993 = vmatprep.mubr.msk.f32.mxu0 %vm647_vm1, %v643_v60  ;;  %v844_v60 = vld [vmem:[%s3067_s7 + $0x18] sm:$0xff] }
 0x17b   : > { %1994 = vmatmul.mubr.msk.f32.gmra.mrb[6].mxu0 %vm647_vm1, %v644_v61  ;;  %v836_v61 = vld [vmem:[%s3066_s6 + $0x18] sm:$0xff] }
 0x17c   : > { %1996 = vmatprep.mubr.msk.f32.mxu0 %vm647_vm1, %v645_v62  ;;  %v845_v62 = vld [vmem:[%s3067_s7 + $0x20] sm:$0xff] }
 0x17f   : > { %1997 = vmatmul.mubr.msk.f32.gmra.mrb[8].mxu0 %vm647_vm1, %v646_v63  ;;  %v837_v63 = vld [vmem:[%s3066_s6 + $0x20] sm:$0xff] }
 0x180   : > { %2009 = vmatprep.mubr.msk.f32.mxu0 %vm849_vm2, %v841_v0  ;;  %v846_v0 = vld [vmem:[%s3067_s7 + $0x28] sm:$0xff] }
 0x242   : > { %v1986_v2 = vpop.f32.mrb[0].mxu0 }
 0x243   : > { %v744_v3 = vpop.f32.mrb[1].mxu0  ;;  %v804_v31 = vmul.f32 %v1986_v2, %v794_v16  ;;  %v819_v32 = vmul.f32 %v1986_v2, %v799_v17  ;;  %v847_v2 = vld [vmem:[%s3067_s7 + $0x30] sm:$0xff] }
 0x244   : > { %v803_v9 = vmul.f32 %v793_v6, %v744_v3  ;;  %v818_v10 = vmul.f32 %v798_v7, %v744_v3  ;;  %v839_v3 = vld [vmem:[%s3066_s6 + $0x30] sm:$0xff] }
 0x246   : > { %v1989_v4 = vpop.f32.mrb[2].mxu0 }
 0x247   : > { %v754_v5 = vpop.f32.mrb[3].mxu0  ;;  %v806_v40 = vmul.f32 %v1989_v4, %v796_v23  ;;  %v821_v41 = vmul.f32 %v1989_v4, %v801_v24  ;;  %v848_v4 = vld [vmem:[%s3067_s7 + $0x38] sm:$0xff] }
 0x248   : > { %v805_v25 = vmul.f32 %v795_v14, %v754_v5  ;;  %v820_v26 = vmul.f32 %v800_v15, %v754_v5  ;;  %v840_v5 = vld [vmem:[%s3066_s6 + $0x38] sm:$0xff] }
 0x24a   : > { %v1992_v8 = vpop.f32.mrb[4].mxu0 }
 0x24b   : > { %v808_v11 = vmul.f32 %v1992_v8, %v798_v7  ;;  %v823_v12 = vmul.f32 %v1992_v8, %v793_v6  ;;  %v764_v13 = vpop.f32.mrb[5].mxu0 }
 0x24c   : > { %v807_v21 = vmul.f32 %v797_v33, %v764_v13  ;;  %v822_v45 = vmul.f32 %v802_v34, %v764_v13 }
 0x24d   : > { %v828_v18 = vadd.f32 %v823_v12, %v818_v10  ;;  %v813_v19 = vsub.f32 %v803_v9, %v808_v11 }
 0x24e   : > { %v1995_v22 = vpop.f32.mrb[6].mxu0 }
 0x24f   : > { %v810_v20 = vmul.f32 %v1995_v22, %v800_v15  ;;  %v825_v27 = vmul.f32 %v1995_v22, %v795_v14  ;;  %v774_v30 = vpop.f32.mrb[7].mxu0 }
 0x250   : > { %v809_v35 = vmul.f32 %v799_v17, %v774_v30  ;;  %v824_v36 = vmul.f32 %v794_v16, %v774_v30 }
 0x251   : > { %v815_v37 = vsub.f32 %v805_v25, %v810_v20  ;;  %v830_v28 = vadd.f32 %v825_v27, %v820_v26 }
 0x252   : > { %v829_v42 = vadd.f32 %v824_v36, %v819_v32  ;;  %v1998_v43 = vpop.f32.mrb[8].mxu0  ;;  %v814_v44 = vsub.f32 %v804_v31, %v809_v35 }
 0x253   : > { %v812_v46 = vmul.f32 %v1998_v43, %v802_v34  ;;  %v827_v47 = vmul.f32 %v1998_v43, %v797_v33  ;;  %v784_v50 = vpop.f32.mrb[9].mxu0 }
 0x254   : > { %v811_v29 = vmul.f32 %v801_v24, %v784_v50  ;;  %v826_v51 = vmul.f32 %v796_v23, %v784_v50  ;;  %v2123_v38 = vpack.c.bf16 %v829_v42, %v828_v18  ;;  %v2131_v52 = vpack.c.bf16 %v814_v44, %v813_v19 }
 0x255   : > { %v817_v53 = vsub.f32 %v807_v21, %v812_v46  ;;  %v832_v54 = vadd.f32 %v827_v47, %v822_v45 }
 0x256   : > { %v816_v55 = vsub.f32 %v806_v40, %v811_v29  ;;  %v831_v56 = vadd.f32 %v826_v51, %v821_v41  ;;  %2124 = vmatprep.subr.bf16.mxu0 %v2123_v38  ;;  %2132 = vmatprep.subr.bf16.mxu1 %v2131_v52 }
 0x257   : > { %2126 = vmatpush3.bf16.msra.mxu0 %v2123_v38  ;;  %2134 = vmatpush3.bf16.msra.mxu1 %v2131_v52 }
 0x258   : > { %v2127_v39 = vpack.c.bf16 %v831_v56, %v830_v28  ;;  %v2135_v48 = vpack.c.bf16 %v816_v55, %v815_v37 }
 0x25a   : > { %2128 = vmatprep.subr.bf16.mxu0 %v2127_v39  ;;  %2136 = vmatprep.subr.bf16.mxu1 %v2135_v48 }
 0x25b   : > { %2130 = vmatpush3.bf16.msra.mxu0 %v2127_v39  ;;  %2138 = vmatpush3.bf16.msra.mxu1 %v2135_v48 }
 0x25c   : > { %2007 = vmatprep.subr.mxu0 %v832_v54  ;;  %2029 = vmatprep.subr.mxu1 %v817_v53 }
 0x25f   : > { %2008 = vmatpush3.msra.mxu0 %v832_v54  ;;  %2030 = vmatpush3.msra.mxu1 %v817_v53 }
 0x260   : > { %2010 = vmatmul.mubr.msk.f32.vlgmr.msra.gmra.mrb[10].mxu0 %vm849_vm2, %v842_v57  ;;  %2032 = vmatmul.mubr.msk.f32.vlgmr.msra.gmra.mrb[0].mxu1 %vm849_vm2, %v834_v49 }
 0x261   : > { %2012 = vmatprep.mubr.msk.f32.mxu0 %vm849_vm2, %v843_v58  ;;  %2034 = vmatprep.mubr.msk.f32.mxu1 %vm849_vm2, %v835_v59 }
 0x264   : > { %2013 = vmatmul.mubr.msk.f32.gmra.mrb[12].mxu0 %vm849_vm2, %v844_v60  ;;  %2035 = vmatmul.mubr.msk.f32.gmra.mrb[2].mxu1 %vm849_vm2, %v836_v61 }
 0x265   : > { %2015 = vmatprep.mubr.msk.f32.mxu0 %vm849_vm2, %v845_v62  ;;  %2037 = vmatprep.mubr.msk.f32.mxu1 %vm849_vm2, %v837_v63 }
 0x268   : > { %2016 = vmatmul.mubr.msk.f32.gmra.mrb[14].mxu0 %vm849_vm2, %v846_v0  ;;  %2038 = vmatmul.mubr.msk.f32.gmra.mrb[4].mxu1 %vm849_vm2, %v838_v1 }
 0x269   : > { %2018 = vmatprep.mubr.msk.f32.mxu0 %vm849_vm2, %v847_v2  ;;  %2040 = vmatprep.mubr.msk.f32.mxu1 %vm849_vm2, %v839_v3 }
 0x26c   : > { %2019 = vmatmul.mubr.msk.f32.gmra.mrb[16].mxu0 %vm849_vm2, %v848_v4  ;;  %2041 = vmatmul.mubr.msk.f32.gmra.mrb[6].mxu1 %vm849_vm2, %v840_v5 }
 0x333   : > { %v2011_v6 = vpop.f32.mrb[10].mxu0  ;;  %v2033_v7 = vpop.f32.mrb[0].mxu1 }
 0x334   : > { %v1075_v8 = vadd.f32 %v2033_v7, %v2011_v6  ;;  %v940_v9 = vpop.f32.mrb[11].mxu0  ;;  %v1069_v10 = vpop.f32.mrb[1].mxu1 }
 0x335   : > { %v1070_v11 = vadd.f32 %v1069_v10, %v940_v9 }
 0x336   : > { %v1113_v12 = vsel %vm503_vm0, %v1075_v8, 0.0 }
 0x337   : > { %v2014_v13 = vpop.f32.mrb[12].mxu0  ;;  %1114 = vadd.xlane.f32.xlu1 %v1113_v12  ;;  %v2036_v14 = vpop.f32.mrb[2].mxu1  ;;  %v1110_v15 = vsel %vm503_vm0, %v1070_v11, 0.0 }
 0x338   : > { %v1085_v16 = vadd.f32 %v2036_v14, %v2014_v13  ;;  %v950_v17 = vpop.f32.mrb[13].mxu0  ;;  %v1079_v18 = vpop.f32.mrb[3].mxu1  ;;  %1111 = vadd.xlane.f32.xlu0 %v1110_v15  ;;  %v1242_v14 = vld [vmem:[%s3070_s10] sm:$0xff]  ;;  %v1243_v15 = vld [vmem:[%s3070_s10 + $0x8] sm:$0xff] }
 0x339   : > { %v1080_v19 = vadd.f32 %v1079_v18, %v950_v17  ;;  %v1244_v17 = vld [vmem:[%s3070_s10 + $0x10] sm:$0xff]  ;;  %v1245_v18 = vld [vmem:[%s3070_s10 + $0x18] sm:$0xff] }
 0x33a   : > { %v1119_v22 = vsel %vm503_vm0, %v1085_v16, 0.0 }
 0x33b   : > { %v2017_v23 = vpop.f32.mrb[14].mxu0  ;;  %1120 = vadd.xlane.f32.xlu1 %v1119_v22  ;;  %v2039_v24 = vpop.f32.mrb[4].mxu1  ;;  %v1116_v25 = vsel %vm503_vm0, %v1080_v19, 0.0 }
 0x33c   : > { %v1095_v26 = vadd.f32 %v2039_v24, %v2017_v23  ;;  %v960_v20 = vpop.f32.mrb[15].mxu0  ;;  %v1089_v27 = vpop.f32.mrb[5].mxu1  ;;  %1117 = vadd.xlane.f32.xlu0 %v1116_v25 }
 0x33d   : > { %v1090_v30 = vadd.f32 %v1089_v27, %v960_v20 }
 0x33e   : > { %v1125_v31 = vsel %vm503_vm0, %v1095_v26, 0.0 }
 0x33f   : > { %v2020_v32 = vpop.f32.mrb[16].mxu0  ;;  %1126 = vadd.xlane.f32.xlu1 %v1125_v31  ;;  %v2042_v33 = vpop.f32.mrb[6].mxu1  ;;  %v1122_v34 = vsel %vm503_vm0, %v1090_v30, 0.0 }
 0x340   : > { %v1105_v35 = vadd.f32 %v2042_v33, %v2020_v32  ;;  %v970_v36 = vpop.f32.mrb[17].mxu0  ;;  %v1099_v37 = vpop.f32.mrb[7].mxu1  ;;  %1123 = vadd.xlane.f32.xlu0 %v1122_v34 }
 0x341   : > { %v1100_v28 = vadd.f32 %v1099_v37, %v970_v36 }
 0x342   : > { %v1131_v40 = vsel %vm503_vm0, %v1105_v35, 0.0 }
 0x343   : > { %1132 = vadd.xlane.f32.xlu1 %v1131_v40  ;;  %v1128_v41 = vsel %vm503_vm0, %v1100_v28, 0.0 }
 0x344   : > { %1129 = vadd.xlane.f32.xlu0 %v1128_v41 }
 0x3c4   : > { %v1115_v42 = vpop.xlane.xlu1 %1114 }
 0x3c5   : > { %v1135_v43 = vmul.f32 0.03125, %v1115_v42  ;;  %v1112_v44 = vpop.xlane.xlu0 %1111 }
 0x3c6   : > { %v1134_v21 = vmul.f32 0.03125, %v1112_v44 }
 0x3c7   : > { %v2714_v45 = vsub.f32 %v1075_v8, %v1135_v43 }
 0x3c8   : > { %v2716_v46 = vsub.f32 %v1070_v11, %v1134_v21  ;;  %v1121_v47 = vpop.xlane.xlu1 %1120 }
 0x3c9   : > { %v1137_v50 = vmul.f32 0.03125, %v1121_v47  ;;  %v1118_v29 = vpop.xlane.xlu0 %1117  ;;  %v1151_v51 = vmul.f32 %v2714_v45, %v2714_v45 }
 0x3ca   : > { %v1136_v38 = vmul.f32 0.03125, %v1118_v29  ;;  %v1150_v52 = vmul.f32 %v2716_v46, %v2716_v46 }
 0x3cb   : > { %v2722_v53 = vsub.f32 %v1085_v16, %v1137_v50  ;;  %v1161_v54 = vsel %vm503_vm0, %v1151_v51, 0.0  ;;  %v2139_v16 = vpack.c.bf16 %v1243_v15, %v1242_v14  ;;  %v1868_v50 = vld [vmem:[%s3068_s8] ss:$0 sm:$0xff] }
 0x3cc   : > { %v2725_v55 = vsub.f32 %v1080_v19, %v1136_v38  ;;  %v1127_v56 = vpop.xlane.xlu1 %1126  ;;  %1162 = vadd.xlane.f32.xlu1 %v1161_v54  ;;  %v1158_v39 = vsel %vm503_vm0, %v1150_v52, 0.0  ;;  %v2143_v19 = vpack.c.bf16 %v1245_v18, %v1244_v17  ;;  %v1600_v17 = vld [vmem:[%s3072_s12 + $0x10] sm:$0xff]  ;;  %v1601_v18 = vld [vmem:[%s3072_s12 + $0x18] sm:$0xff] }
 0x3cd   : > { %v1139_v48 = vmul.f32 0.03125, %v1127_v56  ;;  %1159 = vadd.xlane.f32.xlu0 %v1158_v39  ;;  %v1124_v57 = vpop.xlane.xlu0 %1123  ;;  %v1153_v49 = vmul.f32 %v2722_v53, %v2722_v53  ;;  %2140 = vmatprep.subr.bf16.mxu0 %v2139_v16  ;;  %v1869_v56 = vld [vmem:[%s3069_s9] ss:$0 sm:$0xff] }
 0x3ce   : > { %v1138_v58 = vmul.f32 0.03125, %v1124_v57  ;;  %v1152_v59 = vmul.f32 %v2725_v55, %v2725_v55  ;;  %2142 = vmatpush3.bf16.msra.mxu0 %v2139_v16 }
 0x3cf   : > { %v2732_v60 = vsub.f32 %v1095_v26, %v1139_v48  ;;  %v1167_v61 = vsel %vm503_vm0, %v1153_v49, 0.0  ;;  %2144 = vmatprep.subr.bf16.mxu0 %v2143_v19 }
 0x3d0   : > { %v2735_v62 = vsub.f32 %v1090_v30, %v1138_v58  ;;  %1168 = vadd.xlane.f32.xlu1 %v1167_v61  ;;  %v1133_v63 = vpop.xlane.xlu1 %1132  ;;  %v1164_v0 = vsel %vm503_vm0, %v1152_v59, 0.0 }
 0x3d1   : > { %v1141_v1 = vmul.f32 0.03125, %v1133_v63  ;;  %1165 = vadd.xlane.f32.xlu0 %v1164_v0  ;;  %v1130_v2 = vpop.xlane.xlu0 %1129  ;;  %v1155_v3 = vmul.f32 %v2732_v60, %v2732_v60 }
 0x3d2   : > { %v1140_v4 = vmul.f32 0.03125, %v1130_v2  ;;  %v1154_v5 = vmul.f32 %v2735_v62, %v2735_v62  ;;  %2146 = vmatpush3.bf16.msra.mxu0 %v2143_v19  ;;  %v2151_v19 = vpack.c.bf16 %v1601_v18, %v1600_v17 }
 0x3d3   : > { %v2742_v6 = vsub.f32 %v1105_v35, %v1141_v1  ;;  %v1173_v7 = vsel %vm503_vm0, %v1155_v3, 0.0 }
 0x3d4   : > { %v2745_v8 = vsub.f32 %v1100_v28, %v1140_v4  ;;  %1174 = vadd.xlane.f32.xlu1 %v1173_v7  ;;  %v1170_v9 = vsel %vm503_vm0, %v1154_v5, 0.0 }
 0x3d5   : > { %1171 = vadd.xlane.f32.xlu0 %v1170_v9  ;;  %v1157_v10 = vmul.f32 %v2742_v6, %v2742_v6 }
 0x3d6   : > { %v1156_v11 = vmul.f32 %v2745_v8, %v2745_v8 }
 0x3d7   : > { %v1179_v12 = vsel %vm503_vm0, %v1157_v10, 0.0 }
 0x3d8   : > { %1180 = vadd.xlane.f32.xlu1 %v1179_v12  ;;  %v1176_v13 = vsel %vm503_vm0, %v1156_v11, 0.0 }
 0x3d9   : > { %1177 = vadd.xlane.f32.xlu0 %v1176_v13 }
 0x459   : > { %v1163_v22 = vpop.xlane.xlu1 %1162 }
 0x45a   : > { %v1183_v23 = vmul.f32 0.03125, %v1163_v22  ;;  %v1160_v24 = vpop.xlane.xlu0 %1159  ;;  %v1602_v22 = vld [vmem:[%s3072_s12 + $0x20] sm:$0xff] }
 0x45b   : > { %v1182_v25 = vmul.f32 0.03125, %v1160_v24 }
 0x45c   : > { %v1191_v26 = vadd.f32 1e-05, %v1183_v23  ;;  %v1603_v23 = vld [vmem:[%s3072_s12 + $0x28] sm:$0xff] }
 0x45d   : > { %v1190_v20 = vadd.f32 1e-05, %v1182_v25  ;;  %v1169_v27 = vpop.xlane.xlu1 %1168  ;;  %v2155_v24 = vpack.c.bf16 %v1603_v23, %v1602_v22  ;;  %v1604_v25 = vld [vmem:[%s3072_s12 + $0x30] sm:$0xff] }
 0x45e   : > { %2244 = vrsqrt.f32 %v1191_v26  ;;  %v1185_v30 = vmul.f32 0.03125, %v1169_v27  ;;  %v1166_v31 = vpop.xlane.xlu0 %1165  ;;  %v1605_v26 = vld [vmem:[%s3072_s12 + $0x38] sm:$0xff]  ;;  %v1606_v27 = vld [vmem:[%s3072_s12 + $0x40] sm:$0xff] }
 0x45f   : > { %2246 = vrsqrt.f32 %v1190_v20  ;;  %v1184_v32 = vmul.f32 0.03125, %v1166_v31  ;;  %v2159_v20 = vpack.c.bf16 %v1605_v26, %v1604_v25 }
 0x460   : > { %v1193_v33 = vadd.f32 1e-05, %v1185_v30  ;;  %v1607_v30 = vld [vmem:[%s3072_s12 + $0x48] sm:$0xff] }
 0x461   : > { %v1192_v34 = vadd.f32 1e-05, %v1184_v32  ;;  %v1175_v35 = vpop.xlane.xlu1 %1174  ;;  %v2163_v31 = vpack.c.bf16 %v1607_v30, %v1606_v27  ;;  %v1608_v32 = vld [vmem:[%s3072_s12 + $0x50] sm:$0xff] }
 0x462   : > { %2248 = vrsqrt.f32 %v1193_v33  ;;  %v1187_v36 = vmul.f32 0.03125, %v1175_v35  ;;  %v1172_v37 = vpop.xlane.xlu0 %1171  ;;  %v1609_v33 = vld [vmem:[%s3072_s12 + $0x58] sm:$0xff]  ;;  %v1610_v35 = vld [vmem:[%s3072_s12 + $0x60] sm:$0xff] }
 0x463   : > { %2250 = vrsqrt.f32 %v1192_v34  ;;  %v1186_v28 = vmul.f32 0.03125, %v1172_v37  ;;  %v2167_v34 = vpack.c.bf16 %v1609_v33, %v1608_v32  ;;  %v1612_v37 = vld [vmem:[%s3072_s12 + $0x70] sm:$0xff] }
 0x464   : > { %v1195_v40 = vadd.f32 1e-05, %v1187_v36  ;;  %v1611_v36 = vld [vmem:[%s3072_s12 + $0x68] sm:$0xff] }
 0x465   : > { %v1194_v41 = vadd.f32 1e-05, %v1186_v28  ;;  %v1181_v42 = vpop.xlane.xlu1 %1180  ;;  %v2171_v28 = vpack.c.bf16 %v1611_v36, %v1610_v35 }
 0x466   : > { %2252 = vrsqrt.f32 %v1195_v40  ;;  %v1189_v43 = vmul.f32 0.03125, %v1181_v42  ;;  %v1178_v44 = vpop.xlane.xlu0 %1177  ;;  %v1613_v40 = vld [vmem:[%s3072_s12 + $0x78] sm:$0xff]  ;;  %v1870_v42 = vld [vmem:[%s3071_s11] ss:$0 sm:$0xff] }
 0x467   : > { %2254 = vrsqrt.f32 %v1194_v41  ;;  %v1188_v21 = vmul.f32 0.03125, %v1178_v44  ;;  %v2175_v41 = vpack.c.bf16 %v1613_v40, %v1612_v37 }
 0x468   : > { %v2245_v47 = vpop.eup %2244  ;;  %v1197_v29 = vadd.f32 1e-05, %v1189_v43 }
 0x469   : > { %v2247_v51 = vpop.eup %2246  ;;  %v1207_v38 = vmul.f32 %v2245_v47, %v2714_v45  ;;  %v1196_v52 = vadd.f32 1e-05, %v1188_v21 }
 0x46a   : > { %2256 = vrsqrt.f32 %v1197_v29  ;;  %v1206_v54 = vmul.f32 %v2247_v51, %v2716_v46 }
 0x46b   : > { %v1221_v39 = vmul.f32 %v1868_v50, %v1207_v38  ;;  %2258 = vrsqrt.f32 %v1196_v52 }
 0x46c   : > { %v2249_v48 = vpop.eup %2248  ;;  %v1220_v57 = vmul.f32 %v1868_v50, %v1206_v54 }
 0x46d   : > { %v2251_v49 = vpop.eup %2250  ;;  %v1209_v58 = vmul.f32 %v2249_v48, %v2722_v53  ;;  %v1235_v63 = vadd.f32 %v1869_v56, %v1221_v39 }
 0x46e   : > { %v1234_v59 = vadd.f32 %v1869_v56, %v1220_v57  ;;  %v1208_v61 = vmul.f32 %v2251_v49, %v2725_v55 }
 0x46f   : > { %v1223_v45 = vmul.f32 %v1868_v50, %v1209_v58 }
 0x470   : > { %v2253_v0 = vpop.eup %2252  ;;  %2051 = vmatprep.mubr.msk.f32.mxu0 %vm503_vm0, %v1234_v59  ;;  %v1222_v46 = vmul.f32 %v1868_v50, %v1208_v61 }
 0x471   : > { %v2255_v1 = vpop.eup %2254  ;;  %2052 = vmatmul.mubr.msk.f32.vlgmr.msra.gmra.mrb[18].mxu0 %vm503_vm0, %v1235_v63  ;;  %v1211_v2 = vmul.f32 %v2253_v0, %v2732_v60  ;;  %v1237_v5 = vadd.f32 %v1869_v56, %v1223_v45 }
 0x472   : > { %v1236_v3 = vadd.f32 %v1869_v56, %v1222_v46  ;;  %v1210_v4 = vmul.f32 %v2255_v1, %v2735_v62 }
 0x473   : > { %v1225_v7 = vmul.f32 %v1868_v50, %v1211_v2 }
 0x474   : > { %v2257_v53 = vpop.eup %2256  ;;  %2054 = vmatprep.mubr.msk.f32.mxu0 %vm503_vm0, %v1236_v3  ;;  %v1224_v55 = vmul.f32 %v1868_v50, %v1210_v4 }
 0x475   : > { %v2259_v9 = vpop.eup %2258  ;;  %2055 = vmatmul.mubr.msk.f32.gmra.mrb[20].mxu0 %vm503_vm0, %v1237_v5  ;;  %v1213_v10 = vmul.f32 %v2257_v53, %v2742_v6  ;;  %v1239_v13 = vadd.f32 %v1869_v56, %v1225_v7  ;;  %v1598_v6 = vld [vmem:[%s3072_s12] sm:$0xff] }
 0x476   : > { %v1238_v11 = vadd.f32 %v1869_v56, %v1224_v55  ;;  %v1212_v12 = vmul.f32 %v2259_v9, %v2745_v8  ;;  %v1599_v8 = vld [vmem:[%s3072_s12 + $0x8] sm:$0xff] }
 0x477   : > { %v1227_v14 = vmul.f32 %v1868_v50, %v1213_v10  ;;  %v2147_v16 = vpack.c.bf16 %v1599_v8, %v1598_v6 }
 0x478   : > { %2057 = vmatprep.mubr.msk.f32.mxu0 %vm503_vm0, %v1238_v11  ;;  %v1226_v60 = vmul.f32 %v1868_v50, %v1212_v12 }
 0x479   : > { %2058 = vmatmul.mubr.msk.f32.gmra.mrb[22].mxu0 %vm503_vm0, %v1239_v13  ;;  %v1241_v15 = vadd.f32 %v1869_v56, %v1227_v14  ;;  %2148 = vmatprep.subr.bf16.mxu1 %v2147_v16 }
 0x47a   : > { %v1240_v62 = vadd.f32 %v1869_v56, %v1226_v60  ;;  %2150 = vmatpush3.bf16.msra.mxu1 %v2147_v16 }
 0x47b   : > { %2152 = vmatprep.subr.bf16.mxu1 %v2151_v19 }
 0x47c   : > { %2060 = vmatprep.mubr.msk.f32.mxu0 %vm503_vm0, %v1240_v62 }
 0x47d   : > { %2061 = vmatmul.mubr.msk.f32.gmra.mrb[24].mxu0 %vm503_vm0, %v1241_v15 }
 0x47e   : > { %2154 = vmatpush3.bf16.msra.mxu1 %v2151_v19 }
 0x47f   : > { %2156 = vmatprep.subr.bf16.mxu1 %v2155_v24 }
 0x482   : > { %2158 = vmatpush3.bf16.msra.mxu1 %v2155_v24 }
 0x483   : > { %2160 = vmatprep.subr.bf16.mxu1 %v2159_v20 }
 0x486   : > { %2162 = vmatpush3.bf16.msra.mxu1 %v2159_v20 }
 0x487   : > { %2164 = vmatprep.subr.bf16.mxu1 %v2163_v31 }
 0x48a   : > { %2166 = vmatpush3.bf16.msra.mxu1 %v2163_v31 }
 0x48b   : > { %2168 = vmatprep.subr.bf16.mxu1 %v2167_v34 }
 0x48e   : > { %2170 = vmatpush3.bf16.msra.mxu1 %v2167_v34 }
 0x48f   : > { %2172 = vmatprep.subr.bf16.mxu1 %v2171_v28 }
 0x492   : > { %2174 = vmatpush3.bf16.msra.mxu1 %v2171_v28 }
 0x493   : > { %2176 = vmatprep.subr.bf16.mxu1 %v2175_v41 }
 0x496   : > { %2178 = vmatpush3.bf16.msra.mxu1 %v2175_v41 }
 0x544   : > { %v2053_v43 = vpop.f32.mrb[18].mxu0 }
 0x545   : > { %v2839_v44 = vadd.f32 %v2053_v43, %v1870_v42  ;;  %v1343_v21 = vpop.f32.mrb[19].mxu0 }
 0x546   : > { %v2841_v47 = vadd.f32 %v1870_v42, %v1343_v21 }
 0x547   : > { %v2844_v50 = vmul.f32 0.70710677, %v2839_v44  ;;  %v2895_v28 = vmul.f32 0.5, %v2839_v44 }
 0x548   : > { %v2847_v29 = vmul.f32 0.70710677, %v2841_v47  ;;  %v2056_v51 = vpop.f32.mrb[20].mxu0 }
 0x549   : > { %v1399_v38 = vand.u32 2147483647, %v2844_v50  ;;  %v2850_v52 = vadd.f32 %v2056_v51, %v1870_v42  ;;  %v1353_v54 = vpop.f32.mrb[21].mxu0  ;;  %vm1559_vm3 = vcmp.ge.f32.partialorder %v2844_v50, 0.0 }
 0x54a   : > { %v1398_v56 = vand.u32 2147483647, %v2847_v29  ;;  %v2853_v39 = vadd.f32 %v1870_v42, %v1353_v54  ;;  %vm1558_vm4 = vcmp.ge.f32.partialorder %v2847_v29, 0.0 }
 0x54b   : > { %v1407_v48 = vmul.f32 0.3275911, %v1399_v38  ;;  %v2856_v57 = vmul.f32 0.70710677, %v2850_v52  ;;  %v1511_v4 = vsub.f32 0.0, %v1399_v38 }
 0x54c   : > { %v1406_v49 = vmul.f32 0.3275911, %v1398_v56  ;;  %v2859_v58 = vmul.f32 0.70710677, %v2853_v39  ;;  %v2059_v63 = vpop.f32.mrb[22].mxu0  ;;  %v1510_v60 = vsub.f32 0.0, %v1398_v56 }
 0x54d   : > { %v1415_v59 = vadd.f32 1.0, %v1407_v48  ;;  %v1401_v61 = vand.u32 2147483647, %v2856_v57  ;;  %v1363_v46 = vpop.f32.mrb[23].mxu0  ;;  %v2863_v7 = vadd.f32 %v2059_v63, %v1870_v42  ;;  %v1519_v12 = vmul.f32 %v1511_v4, %v1399_v38 }
 0x54e   : > { %v1414_v45 = vadd.f32 1.0, %v1406_v49  ;;  %v1400_v0 = vand.u32 2147483647, %v2859_v58  ;;  %v2865_v9 = vadd.f32 %v1870_v42, %v1363_v46  ;;  %v1518_v20 = vmul.f32 %v1510_v60, %v1398_v56 }
 0x54f   : > { %2260 = vrcp.f32 %v1415_v59  ;;  %v1409_v1 = vmul.f32 0.3275911, %v1401_v61  ;;  %v2868_v10 = vmul.f32 0.70710677, %v2863_v7  ;;  %v1513_v6 = vsub.f32 0.0, %v1401_v61 }
 0x550   : > { %v1408_v2 = vmul.f32 0.3275911, %v1400_v0  ;;  %v2062_v3 = vpop.f32.mrb[24].mxu0  ;;  %2262 = vrcp.f32 %v1414_v45  ;;  %v2871_v11 = vmul.f32 0.70710677, %v2865_v9  ;;  %v1512_v23 = vsub.f32 0.0, %v1400_v0 }
 0x551   : > { %v1417_v5 = vadd.f32 1.0, %v1409_v1  ;;  %v1373_v53 = vpop.f32.mrb[25].mxu0  ;;  %v1403_v13 = vand.u32 2147483647, %v2868_v10  ;;  %v2874_v14 = vadd.f32 %v2062_v3, %v1870_v42  ;;  %v1528_v22 = vmul.f32 1.442695, %v1519_v12 }
 0x552   : > { %v1416_v55 = vadd.f32 1.0, %v1408_v2  ;;  %v1402_v62 = vand.u32 2147483647, %v2871_v11  ;;  %v2877_v15 = vadd.f32 %v1870_v42, %v1373_v53  ;;  %v1521_v31 = vmul.f32 %v1513_v6, %v1401_v61 }
 0x553   : > { %2264 = vrcp.f32 %v1417_v5  ;;  %v1411_v8 = vmul.f32 0.3275911, %v1403_v13  ;;  %v2880_v16 = vmul.f32 0.70710677, %v2874_v14  ;;  %v1515_v32 = vsub.f32 0.0, %v1403_v13 }
 0x554   : > { %2266 = vrcp.f32 %v1416_v55  ;;  %v1410_v17 = vmul.f32 0.3275911, %v1402_v62  ;;  %v2883_v18 = vmul.f32 0.70710677, %v2877_v15  ;;  %v1520_v40 = vmul.f32 %v1512_v23, %v1400_v0 }
 0x555   : > { %v1419_v24 = vadd.f32 1.0, %v1411_v8  ;;  %v1405_v25 = vand.u32 2147483647, %v2880_v16  ;;  %v1514_v41 = vsub.f32 0.0, %v1402_v62  ;;  %v1526_v51 = vmul.f32 1.442695, %v1518_v20 }
 0x556   : > { %v1418_v27 = vadd.f32 1.0, %v1410_v17  ;;  %v1404_v30 = vand.u32 2147483647, %v2883_v18  ;;  %v1532_v54 = vmul.f32 1.442695, %v1521_v31  ;;  %v1523_v56 = vmul.f32 %v1515_v32, %v1403_v13 }
 0x557   : > { %2268 = vrcp.f32 %v1419_v24  ;;  %v1413_v33 = vmul.f32 0.3275911, %v1405_v25  ;;  %v1530_v61 = vmul.f32 1.442695, %v1520_v40  ;;  %v1522_v63 = vmul.f32 %v1514_v41, %v1402_v62 }
 0x558   : > { %2270 = vrcp.f32 %v1418_v27  ;;  %v1412_v36 = vmul.f32 0.3275911, %v1404_v30  ;;  %v1516_v45 = vsub.f32 0.0, %v1404_v30  ;;  %v2905_v1 = vmul.f32 0.5, %v2841_v47 }
 0x559   : > { %v2885_v19 = vpop.eup %2260  ;;  %v1421_v42 = vadd.f32 1.0, %v1413_v33  ;;  %2272 = vpow2.f32 %v1528_v22  ;;  %v1536_v4 = vmul.f32 1.442695, %v1523_v56  ;;  %v1517_v5 = vsub.f32 0.0, %v1405_v25 }
 0x55a   : > { %v1439_v26 = vmul.f32 1.0614054, %v2885_v19  ;;  %v2890_v34 = vpop.eup %2262  ;;  %v1420_v38 = vadd.f32 1.0, %v1412_v36  ;;  %v1534_v62 = vmul.f32 1.442695, %v1522_v63  ;;  %v1524_v6 = vmul.f32 %v1516_v45, %v1404_v30 }
 0x55b   : > { %2274 = vrcp.f32 %v1421_v42  ;;  %v1438_v48 = vmul.f32 1.0614054, %v2890_v34  ;;  %vm1561_vm5 = vcmp.ge.f32.partialorder %v2856_v57, 0.0  ;;  %vm1560_vm6 = vcmp.ge.f32.partialorder %v2859_v58, 0.0 }
 0x55c   : > { %v1447_v35 = vadd.f32 -1.4531521, %v1439_v26  ;;  %2276 = vrcp.f32 %v1420_v38  ;;  %v1525_v26 = vmul.f32 %v1517_v5, %v1405_v25  ;;  %v1538_v40 = vmul.f32 1.442695, %v1524_v6 }
 0x55d   : > { %v2892_v37 = vpop.eup %2264  ;;  %v1446_v0 = vadd.f32 -1.4531521, %v1438_v48  ;;  %2278 = vpow2.f32 %v1526_v51  ;;  %vm1563_vm7 = vcmp.ge.f32.partialorder %v2868_v10, 0.0  ;;  %vm1562_vm8 = vcmp.ge.f32.partialorder %v2871_v11, 0.0 }
 0x55e   : > { %v2897_v43 = vpop.eup %2266  ;;  %v1455_v21 = vmul.f32 %v2885_v19, %v1447_v35  ;;  %v1441_v59 = vmul.f32 1.0614054, %v2892_v37  ;;  %2280 = vpow2.f32 %v1532_v54  ;;  %v1387_v10 = vmul.f32 0.5, %v2863_v7 }
 0x55f   : > { %v1440_v44 = vmul.f32 1.0614054, %v2897_v43  ;;  %v1454_v53 = vmul.f32 %v2890_v34, %v1446_v0  ;;  %2282 = vpow2.f32 %v1530_v61  ;;  %vm1564_vm9 = vcmp.ge.f32.partialorder %v2883_v18, 0.0 }
 0x560   : > { %v1463_v49 = vadd.f32 1.4214138, %v1455_v21  ;;  %v1449_v3 = vadd.f32 -1.4531521, %v1441_v59  ;;  %2284 = vpow2.f32 %v1536_v4  ;;  %vm1565_vm10 = vcmp.ge.f32.partialorder %v2880_v16, 0.0 }
 0x561   : > { %v1448_v2 = vadd.f32 -1.4531521, %v1440_v44  ;;  %v2910_v60 = vpop.eup %2268  ;;  %v1462_v47 = vadd.f32 1.4214138, %v1454_v53  ;;  %2286 = vpow2.f32 %v1534_v62  ;;  %v1389_v18 = vmul.f32 0.5, %v2874_v14 }
 0x562   : > { %v1471_v46 = vmul.f32 %v2885_v19, %v1463_v49  ;;  %v1457_v13 = vmul.f32 %v2892_v37, %v1449_v3  ;;  %v2912_v8 = vpop.eup %2270  ;;  %v1443_v24 = vmul.f32 1.0614054, %v2910_v60  ;;  %2288 = vpow2.f32 %v1538_v40 }
 0x563   : > { %v1456_v12 = vmul.f32 %v2897_v43, %v1448_v2  ;;  %v1470_v20 = vmul.f32 %v2890_v34, %v1462_v47  ;;  %v1442_v27 = vmul.f32 1.0614054, %v2912_v8  ;;  %v2273_v31 = vpop.eup %2272 }
 0x564   : > { %v1479_v55 = vadd.f32 -0.28449672, %v1471_v46  ;;  %v1465_v23 = vadd.f32 1.4214138, %v1457_v13  ;;  %v1451_v35 = vadd.f32 -1.4531521, %v1443_v24 }
 0x565   : > { %v1464_v22 = vadd.f32 1.4214138, %v1456_v12  ;;  %v2920_v36 = vpop.eup %2274  ;;  %v1478_v41 = vadd.f32 -0.28449672, %v1470_v20  ;;  %v1450_v42 = vadd.f32 -1.4531521, %v1442_v27 }
 0x566   : > { %v1487_v17 = vmul.f32 %v2885_v19, %v1479_v55  ;;  %v1473_v30 = vmul.f32 %v2892_v37, %v1465_v23  ;;  %v2923_v25 = vpop.eup %2276  ;;  %v1459_v54 = vmul.f32 %v2910_v60, %v1451_v35  ;;  %v1445_v44 = vmul.f32 1.0614054, %v2920_v36 }
 0x567   : > { %v1472_v33 = vmul.f32 %v2897_v43, %v1464_v22  ;;  %v1486_v56 = vmul.f32 %v2890_v34, %v1478_v41  ;;  %v1458_v48 = vmul.f32 %v2912_v8, %v1450_v42  ;;  %v1444_v49 = vmul.f32 1.0614054, %v2923_v25  ;;  %v2279_v0 = vpop.eup %2278 }
 0x568   : > { %v1495_v32 = vadd.f32 0.2548296, %v1487_v17  ;;  %v1481_v38 = vadd.f32 -0.28449672, %v1473_v30  ;;  %v1467_v45 = vadd.f32 1.4214138, %v1459_v54  ;;  %v2281_v3 = vpop.eup %2280 }
 0x569   : > { %v1480_v51 = vadd.f32 -0.28449672, %v1472_v33  ;;  %v1466_v46 = vadd.f32 1.4214138, %v1458_v48  ;;  %v1452_v2 = vadd.f32 -1.4531521, %v1444_v49  ;;  %v2283_v12 = vpop.eup %2282 }
 0x56a   : > { %v1503_v21 = vmul.f32 %v2885_v19, %v1495_v32  ;;  %v1489_v63 = vmul.f32 %v2892_v37, %v1481_v38  ;;  %v1494_v19 = vadd.f32 0.2548296, %v1486_v56  ;;  %v1475_v55 = vmul.f32 %v2910_v60, %v1467_v45  ;;  %v2285_v20 = vpop.eup %2284 }
 0x56b   : > { %v1488_v61 = vmul.f32 %v2897_v43, %v1480_v51  ;;  %v1474_v62 = vmul.f32 %v2912_v8, %v1466_v46  ;;  %v1460_v6 = vmul.f32 %v2923_v25, %v1452_v2  ;;  %v1453_v47 = vadd.f32 -1.4531521, %v1445_v44  ;;  %v2287_v41 = vpop.eup %2286 }
 0x56c   : > { %v1543_v59 = vmul.f32 %v2273_v31, %v1503_v21  ;;  %v1497_v53 = vadd.f32 0.2548296, %v1489_v63  ;;  %v1502_v13 = vmul.f32 %v2890_v34, %v1494_v19  ;;  %v1483_v24 = vadd.f32 -0.28449672, %v1475_v55 }
 0x56d   : > { %v1496_v5 = vadd.f32 0.2548296, %v1488_v61  ;;  %v1482_v31 = vadd.f32 -0.28449672, %v1474_v62  ;;  %v1468_v32 = vadd.f32 1.4214138, %v1460_v6  ;;  %v1461_v33 = vmul.f32 %v2920_v36, %v1453_v47 }
 0x56e   : > { %v1551_v4 = vsub.f32 1.0, %v1543_v59  ;;  %v1505_v23 = vmul.f32 %v2892_v37, %v1497_v53  ;;  %v1542_v27 = vmul.f32 %v2279_v0, %v1502_v13  ;;  %v1491_v40 = vmul.f32 %v2910_v60, %v1483_v24 }
 0x56f   : > { %v1504_v22 = vmul.f32 %v2897_v43, %v1496_v5  ;;  %v1540_v42 = vmul.f32 1.442695, %v1525_v26  ;;  %v1490_v43 = vmul.f32 %v2912_v8, %v1482_v31  ;;  %v1476_v37 = vmul.f32 %v2923_v25, %v1468_v32  ;;  %v2289_v26 = vpop.eup %2288 }
 0x570   : > { %v1567_v17 = vsub.f32 0.0, %v1551_v4  ;;  %v1545_v35 = vmul.f32 %v2281_v3, %v1505_v23  ;;  %v1550_v21 = vsub.f32 1.0, %v1542_v27  ;;  %v1499_v54 = vadd.f32 0.2548296, %v1491_v40 }
 0x571   : > { %v1544_v30 = vmul.f32 %v2283_v12, %v1504_v22  ;;  %v1469_v56 = vadd.f32 1.4214138, %v1461_v33  ;;  %v1498_v44 = vadd.f32 0.2548296, %v1490_v43  ;;  %v1484_v50 = vadd.f32 -0.28449672, %v1476_v37 }
 0x572   : > { %v1575_v34 = vsel %vm1559_vm3, %v1551_v4, %v1567_v17  ;;  %v1553_v38 = vsub.f32 1.0, %v1545_v35  ;;  %v1566_v49 = vsub.f32 0.0, %v1550_v21  ;;  %v1507_v63 = vmul.f32 %v2910_v60, %v1499_v54  ;;  %v1880_v54 = vld [vmem:[%s3074_s14] ss:$0 sm:$0xff] }
 0x573   : > { %v1552_v51 = vsub.f32 1.0, %v1544_v30  ;;  %v1583_v48 = vadd.f32 1.0, %v1575_v34  ;;  %v1477_v45 = vmul.f32 %v2920_v36, %v1469_v56  ;;  %2290 = vpow2.f32 %v1540_v42 }
 0x574   : > { %v1569_v61 = vsub.f32 0.0, %v1553_v38  ;;  %v1574_v0 = vsel %vm1558_vm4, %v1550_v21, %v1566_v49  ;;  %v1506_v19 = vmul.f32 %v2912_v8, %v1498_v44  ;;  %v1492_v46 = vmul.f32 %v2923_v25, %v1484_v50  ;;  %v2292_v50 = vld [vmem:[%s2500_s25 + $0x8] sm:$0xff] }
 0x575   : > { %v1568_v59 = vsub.f32 0.0, %v1552_v51  ;;  %v1582_v2 = vadd.f32 1.0, %v1574_v0  ;;  %v1547_v5 = vmul.f32 %v2285_v20, %v1507_v63  ;;  %v1384_v60 = vmul.f32 0.5, %v2853_v39 }
 0x576   : > { %v1577_v4 = vsel %vm1561_vm5, %v1553_v38, %v1569_v61  ;;  %v1546_v55 = vmul.f32 %v2287_v41, %v1506_v19  ;;  %v1500_v12 = vadd.f32 0.2548296, %v1492_v46  ;;  %v1591_v29 = vmul.f32 %v1583_v48, %v2895_v28 }
 0x577   : > { %v1576_v3 = vsel %vm1560_vm6, %v1552_v51, %v1568_v59  ;;  %v1590_v13 = vmul.f32 %v1582_v2, %v2905_v1  ;;  %v1555_v8 = vsub.f32 1.0, %v1547_v5  ;;  %v1485_v62 = vadd.f32 -0.28449672, %v1477_v45  ;;  %v2293_v45 = vld [vmem:[%s2500_s25] sm:$0xff] }
 0x578   : > { %v1584_v53 = vadd.f32 1.0, %v1576_v3  ;;  %v1585_v47 = vadd.f32 1.0, %v1577_v4  ;;  %v1554_v17 = vsub.f32 1.0, %v1546_v55  ;;  %v1508_v58 = vmul.f32 %v2923_v25, %v1500_v12  ;;  %v2294_v3 = vld [vmem:[%s2500_s25 + $0x18] sm:$0xff] }
 0x579   : > { %2095 = vmatprep.mubr.f32.mxu1 %v1590_v13  ;;  %v1571_v57 = vsub.f32 0.0, %v1555_v8  ;;  %v1493_v22 = vmul.f32 %v2920_v36, %v1485_v62  ;;  %v1385_v39 = vmul.f32 0.5, %v2850_v52  ;;  %v1386_v32 = vmul.f32 0.5, %v2865_v9 }
 0x57a   : > { %v1592_v6 = vmul.f32 %v1584_v53, %v1384_v60  ;;  %2096 = vmatmul.mubr.f32.vlgmr.msra.gmra.mrb[8].mxu1 %v1591_v29  ;;  %v1570_v23 = vsub.f32 0.0, %v1554_v17  ;;  %v1548_v28 = vmul.f32 %v2289_v26, %v1508_v58  ;;  %v1388_v42 = vmul.f32 0.5, %v2877_v15  ;;  %v1879_v15 = vld [vmem:[%s3073_s13] ss:$0 sm:$0xff]  ;;  %v2295_v53 = vld [vmem:[%s2500_s25 + $0x10] sm:$0xff] }
 0x57b   : > { %v1579_v1 = vsel %vm1563_vm7, %v1555_v8, %v1571_v57  ;;  %v1501_v24 = vadd.f32 0.2548296, %v1493_v22  ;;  %v1593_v20 = vmul.f32 %v1585_v47, %v1385_v39  ;;  %v2296_v8 = vld [vmem:[%s2500_s25 + $0x28] sm:$0xff] }
 0x57c   : > { %2098 = vmatprep.mubr.f32.mxu1 %v1592_v6  ;;  %v1578_v27 = vsel %vm1562_vm8, %v1554_v17, %v1570_v23  ;;  %v1587_v31 = vadd.f32 1.0, %v1579_v1  ;;  %v1556_v25 = vsub.f32 1.0, %v1548_v28  ;;  %v2297_v6 = vld [vmem:[%s2500_s25 + $0x20] sm:$0xff]  ;;  %v2298_v28 = vld [vmem:[%s2500_s25 + $0x38] sm:$0xff] }
 0x57d   : > { %v1586_v33 = vadd.f32 1.0, %v1578_v27  ;;  %v1509_v34 = vmul.f32 %v2920_v36, %v1501_v24  ;;  %v2291_v52 = vpop.eup %2290  ;;  %v2299_v24 = vld [vmem:[%s2500_s25 + $0x30] sm:$0xff] }
 0x57e   : > { %2099 = vmatmul.mubr.f32.gmra.mrb[10].mxu1 %v1593_v20  ;;  %v1572_v30 = vsub.f32 0.0, %v1556_v25  ;;  %v1595_v40 = vmul.f32 %v1587_v31, %v1387_v10 }
 0x57f   : > { %v1594_v11 = vmul.f32 %v1586_v33, %v1386_v32  ;;  %v1549_v35 = vmul.f32 %v2291_v52, %v1509_v34 }
 0x580   : > { %v1580_v41 = vsel %vm1564_vm9, %v1556_v25, %v1572_v30 }
 0x581   : > { %2101 = vmatprep.mubr.f32.mxu1 %v1594_v11  ;;  %v1588_v21 = vadd.f32 1.0, %v1580_v41  ;;  %v1557_v9 = vsub.f32 1.0, %v1549_v35 }
 0x582   : > { %2102 = vmatmul.mubr.f32.gmra.mrb[12].mxu1 %v1595_v40 }
 0x583   : > { %v1596_v36 = vmul.f32 %v1588_v21, %v1388_v42  ;;  %v1573_v43 = vsub.f32 0.0, %v1557_v9 }
 0x585   : > { %2104 = vmatprep.mubr.f32.mxu1 %v1596_v36  ;;  %v1581_v7 = vsel %vm1565_vm10, %v1557_v9, %v1573_v43 }
 0x586   : > { %v1589_v37 = vadd.f32 1.0, %v1581_v7 }
 0x588   : > { %v1597_v51 = vmul.f32 %v1589_v37, %v1389_v18 }
 0x58a   : > { %2105 = vmatmul.mubr.f32.gmra.mrb[14].mxu1 %v1597_v51 }
 0x64d   : > { %v2097_v38 = vpop.f32.mrb[8].mxu1 }
 0x64e   : > { %v1693_v16 = vadd.f32 %v2097_v38, %v1879_v15  ;;  %v1687_v56 = vpop.f32.mrb[9].mxu1 }
 0x64f   : > { %v1688_v48 = vadd.f32 %v1879_v15, %v1687_v56 }
 0x650   : > { %v1734_v14 = vmul.f32 %v1880_v54, %v1693_v16 }
 0x651   : > { %v1733_v49 = vmul.f32 %v1880_v54, %v1688_v48  ;;  %v2100_v44 = vpop.f32.mrb[10].mxu1 }
 0x652   : > { %v1742_v59 = vadd.f32 %v2292_v50, %v1734_v14  ;;  %v1703_v61 = vadd.f32 %v2100_v44, %v1879_v15  ;;  %v1697_v63 = vpop.f32.mrb[11].mxu1 }
 0x653   : > { %v1741_v26 = vadd.f32 %v2293_v45, %v1733_v49  ;;  %v1698_v0 = vadd.f32 %v1879_v15, %v1697_v63 }
 0x654   : > { %1750 = vst.msk [vmem:[%s2984_s3 + $0x8] sm:$0xff] %vm503_vm0, %v1742_v59  ;;  %v1736_v19 = vmul.f32 %v1880_v54, %v1703_v61 }
 0x655   : > { %1749 = vst.msk [vmem:[%s2984_s3] sm:$0xff] %vm503_vm0, %v1741_v26  ;;  %v1735_v46 = vmul.f32 %v1880_v54, %v1698_v0  ;;  %v2103_v2 = vpop.f32.mrb[12].mxu1 }
 0x656   : > { %v1744_v4 = vadd.f32 %v2294_v3, %v1736_v19  ;;  %v1713_v5 = vadd.f32 %v2103_v2, %v1879_v15  ;;  %v1707_v60 = vpop.f32.mrb[13].mxu1 }
 0x657   : > { %v1743_v55 = vadd.f32 %v2295_v53, %v1735_v46  ;;  %v1708_v12 = vadd.f32 %v1879_v15, %v1707_v60 }
 0x658   : > { %1752 = vst.msk [vmem:[%s2984_s3 + $0x18] sm:$0xff] %vm503_vm0, %v1744_v4  ;;  %v1738_v29 = vmul.f32 %v1880_v54, %v1713_v5 }
 0x659   : > { %1751 = vst.msk [vmem:[%s2984_s3 + $0x10] sm:$0xff] %vm503_vm0, %v1743_v55  ;;  %v1737_v13 = vmul.f32 %v1880_v54, %v1708_v12 }
 0x65a   : > { %v1746_v62 = vadd.f32 %v2296_v8, %v1738_v29 }
 0x65b   : > { %v1745_v47 = vadd.f32 %v2297_v6, %v1737_v13 }
 0x65c   : > { %1754 = vst.msk [vmem:[%s2984_s3 + $0x28] sm:$0xff] %vm503_vm0, %v1746_v62 }
 0x65d   : > { %1753 = vst.msk [vmem:[%s2984_s3 + $0x20] sm:$0xff] %vm503_vm0, %v1745_v47  ;;  %v2106_v17 = vpop.f32.mrb[14].mxu1 }
 0x65e   : > { %v1723_v58 = vadd.f32 %v2106_v17, %v1879_v15  ;;  %v1717_v57 = vpop.f32.mrb[15].mxu1 }
 0x65f   : > { %v1718_v22 = vadd.f32 %v1879_v15, %v1717_v57 }
 0x660   : > { %v1740_v39 = vmul.f32 %v1880_v54, %v1723_v58 }
 0x661   : > { %v1739_v23 = vmul.f32 %v1880_v54, %v1718_v22 }
 0x662   : > { %v1748_v1 = vadd.f32 %v2298_v28, %v1740_v39 }
 0x663   : > { %v1747_v20 = vadd.f32 %v2299_v24, %v1739_v23 }
 0x664   : > { %1756 = vst.msk [vmem:[%s2984_s3 + $0x38] sm:$0xff] %vm503_vm0, %v1748_v1 }
 0x665   : > { %1755 = vst.msk [vmem:[%s2984_s3 + $0x30] sm:$0xff] %vm503_vm0, %v1747_v20 }
 0x666   : > { %2313 = shalt.err (!%p2310_p3)
}
 0x667   : > { %s2314_s25 = scalar_lea.hbm %s3008_s0, 1024  ;;  %s2318_s16 = scalar_lea.hbm %s3075_s15, 2048 }
 0x668   : > { %p2315_p4 = scmp.ne.s32.totalorder %s3008_s0, %s2314_s25  ;;  %p2319_p9 = scmp.lt.u32.totalorder %s3008_s0, %s3075_s15 }
 0x669   : > { %p2320_p10 = scmp.lt.u32.totalorder %s2318_s16, %s2314_s25  ;;  %p2322_p12 = scmp.lt.u32.totalorder %s2314_s25, %s3008_s0 }
 0x66a   : > { %p2316_p7 = pnand %p2315_p4, %p2485_p5 }
 0x66b   : > { %p2321_p11 = por %p2320_p10, %p2319_p9 }
 0x66c   : > { %p2317_p8 = pneg %p2316_p7 }
 0x66d   : > { %p2323_p13 = por %p2322_p12, %p2321_p11 }
 0x66f   : > { %p2324_p0 = pnand %p2323_p13, %p2317_p8 }
 0x671   : > { %2327 = shalt.err (!%p2324_p0)
}
 0x672   : > { %s2365_s26 = smov 128   ;;  %s2366_s2 = smov 8  }
 0x673   : > { %2187 = dma.vmem_to_hbm [thread:$0]  (%p2485_p5), %s3010_s30, 1024, %s3008_s0, %s3019_s22, %s2365_s26, %s2365_s26, %s2366_s2  }
 0x674 PF: > { %p2193_p1 = scmp.ge.s32.totalorder %s2362_s21, 2  ;;  %s1786_s27 = sand.u32 1, %s2350_s18  }
 0x675   : > { %s1787_s25 = scalar_lea.sflag [#allocation3], %s1786_s27 }
 0x676   : > { %p2190_p2 = pnand %p2193_p1, %p2489_p6 }
 0x678   : > { %2345 = dma.done.wait (!%p2190_p2), %s1787_s25, 1024  }
 0x679   : > { %2347 = vsyncadd (!%p2190_p2), %s1787_s25, 4294966272  ;;  %s3087_s17 = sld [smem:[#allocation5_spill]]  ;;  %p25_p3 = scmp.ge.s32.totalorder %s2472_s24, 4  }
 0x67a   : > { %s3088_s18 = smov %s2354_s19  ;;  %s3089_s19 = smov %s2358_s20 }
 0x67b   : > { %s3091_s21 = smov %s2472_s24  ;;  %27 = sbr.rel (!%p25_p3) target bundleno = 8 (0x8), region = 115 }
 0x67f   : > { %s3090_s20 = smov %s3087_s17 }
 0x682   :  { %1792 = vsyncpa [#allocation3], 1 }
 0x683   :  { %1794 = vsyncpa [#allocation3 + $0x1], 1 }

</bundles_post_ra>
